<compile_context>
chip_gen: v7x
topology: tpu7x:2x2x1
jax: 0.10.0
libtpu: 0.0.40
codegen_flags: <defaults>
</compile_context>

<pallas_src>
import math
import functools

import jax
import jax.numpy as jnp
from jax.experimental import pallas as pl
from jax.experimental.pallas import tpu as pltpu


_VMEM_LIMIT = 48 * 1024 * 1024  # fits v7x (64 MiB physical) as well as v5e/v6e


# ---------------------------------------------------------------------------
# small helpers
# ---------------------------------------------------------------------------
def _pick_tile(n, target, mult):
    """Largest tile <= target that divides n and is a multiple of mult, else n."""
    if n <= target:
        return n
    t = (target // mult) * mult
    while t >= mult:
        if n % t == 0:
            return t
        t -= mult
    return n


def _round_up(n, m):
    return ((n + m - 1) // m) * m


def _gelu_tanh(x):
    c = math.sqrt(2.0 / math.pi)
    return 0.5 * x * (1.0 + jnp.tanh(c * (x + 0.044715 * x * x * x)))


def _layernorm(x, gamma, beta, eps):
    mean = jnp.mean(x, axis=-1, keepdims=True)
    var = jnp.mean((x - mean) ** 2, axis=-1, keepdims=True)
    return (x - mean) * jax.lax.rsqrt(var + eps) * gamma + beta


# ---------------------------------------------------------------------------
# pl.Buffered(1) feature probe: single-buffer constant-index blocks (v7x VMEM
# headroom). Probed once eagerly; any failure falls back to default buffering.
# ---------------------------------------------------------------------------
_BUFFERED_OK = None


def _buffered_ok():
    global _BUFFERED_OK
    if _BUFFERED_OK is None:
        try:
            def _probe(x_ref, o_ref):
                o_ref[...] = x_ref[...] + 1.0

            spec = pl.BlockSpec((8, 128), lambda i: (i, 0),
                                pipeline_mode=pl.Buffered(1))
            fn = pl.pallas_call(
                _probe,
                out_shape=jax.ShapeDtypeStruct((16, 128), jnp.float32),
                grid=(2,),
                in_specs=[spec],
                out_specs=pl.BlockSpec((8, 128), lambda i: (i, 0)))
            res = jax.block_until_ready(fn(jnp.zeros((16, 128), jnp.float32)))
            _BUFFERED_OK = bool(jnp.all(res == 1.0))
        except Exception:
            _BUFFERED_OK = False
    return _BUFFERED_OK


def _spec(block_shape, index_map, single_buffer=False):
    if single_buffer and _buffered_ok():
        return pl.BlockSpec(block_shape, index_map,
                            pipeline_mode=pl.Buffered(1))
    return pl.BlockSpec(block_shape, index_map)


# ---------------------------------------------------------------------------
# Kernel 1: embedding sum + LayerNorm, grid over (B, seq tiles)
# ---------------------------------------------------------------------------
def embedding_ln_kernel(tok_ref, typ_ref, pos_ref, gamma_ref, beta_ref, out_ref):
    x = tok_ref[0] + typ_ref[0] + pos_ref[...]            # (ts, D)
    out_ref[0] = _layernorm(x, gamma_ref[...], beta_ref[...], 1e-12)


def embedding_layernorm(tok, typ, pos, gamma, beta):
    B, S, D = tok.shape
    ts = _pick_tile(S, 512, 8)
    return pl.pallas_call(
        embedding_ln_kernel,
        out_shape=jax.ShapeDtypeStruct((B, S, D), jnp.float32),
        grid=(B, S // ts),
        in_specs=[
            pl.BlockSpec((1, ts, D), lambda b, s: (b, s, 0)),   # token emb
            pl.BlockSpec((1, ts, D), lambda b, s: (b, s, 0)),   # type emb
            pl.BlockSpec((ts, D), lambda b, s: (s, 0)),         # position emb (S, D)
            _spec((1, D), lambda b, s: (0, 0), single_buffer=True),   # gamma
            _spec((1, D), lambda b, s: (0, 0), single_buffer=True),   # beta
        ],
        out_specs=pl.BlockSpec((1, ts, D), lambda b, s: (b, s, 0)),
        compiler_params=pltpu.CompilerParams(
            dimension_semantics=("parallel", "parallel")),
    )(tok, typ, pos, gamma, beta)


# ---------------------------------------------------------------------------
# Kernel 2: fused Q/K/V projection, grid over (B, seq tiles).
# One (ts, D) x (D, 3D) bf16 matmul; Q/K/V written back as bf16 (B, S, D).
# ---------------------------------------------------------------------------
def qkv_proj_kernel(h_ref, w_ref, b_ref, q_ref, k_ref, v_ref):
    D = q_ref.shape[2]
    h = h_ref[0].astype(jnp.bfloat16)                      # (ts, D)
    y = jnp.dot(h, w_ref[...], preferred_element_type=jnp.float32) + b_ref[...]
    y = y.astype(jnp.bfloat16)                             # (ts, 3D)
    q_ref[0] = y[:, :D]
    k_ref[0] = y[:, D:2 * D]
    v_ref[0] = y[:, 2 * D:]


def qkv_projection(h, w_qkv, b_qkv):
    B, S, D = h.shape
    ts = _pick_tile(S, 256, 16)
    act = lambda: pl.BlockSpec((1, ts, D), lambda b, s: (b, s, 0))
    return pl.pallas_call(
        qkv_proj_kernel,
        out_shape=tuple(jax.ShapeDtypeStruct((B, S, D), jnp.bfloat16)
                        for _ in range(3)),
        grid=(B, S // ts),
        in_specs=[
            act(),                                                         # h tile
            _spec((D, 3 * D), lambda b, s: (0, 0), single_buffer=True),    # Wqkv
            _spec((1, 3 * D), lambda b, s: (0, 0), single_buffer=True),    # bqkv
        ],
        out_specs=(act(), act(), act()),
        compiler_params=pltpu.CompilerParams(
            dimension_semantics=("parallel", "parallel"),
            vmem_limit_bytes=_VMEM_LIMIT),
    )(h, w_qkv, b_qkv)


# ---------------------------------------------------------------------------
# Kernel 3: attention + FFN + GELU + residual LayerNorm.
# Grid over (B, query tiles); full bf16 K/V resident per step.
# Heads are split via static lane slices of the (.., D) blocks (no transposes,
# no head-major HBM layout); per-head contexts are concatenated along lanes
# into a (tq, D) ctx that feeds ONE full-K (D, D) FFN matmul.
# ---------------------------------------------------------------------------
def attn_ffn_ln_kernel(q_ref, k_ref, v_ref, h_ref, mask_ref,
                       wff_ref, bff_ref, gamma_ref, beta_ref, out_ref,
                       *, num_heads):
    D = wff_ref.shape[0]
    hd = D // num_heads
    scale = 1.0 / math.sqrt(float(D))                       # reference scaling

    q = q_ref[0]                                            # (tq, D) bf16
    k = k_ref[0]                                            # (S,  D) bf16
    v = v_ref[0]                                            # (S,  D) bf16
    mask = mask_ref[0]                                      # (1,  S) f32 bias

    ctx_parts = []
    for hh in range(num_heads):
        lo, hi = hh * hd, (hh + 1) * hd
        qh, kh, vh = q[:, lo:hi], k[:, lo:hi], v[:, lo:hi]  # (tq|S, hd) bf16
        s = jax.lax.dot_general(qh, kh, (((1,), (1,)), ((), ())),
                                preferred_element_type=jnp.float32) * scale
        s = s + mask                                        # (tq, S)
        s = s - jnp.max(s, axis=-1, keepdims=True)
        # f32 exp keeps v5e (no bf16 EUP) happy; bf16 exp is a v6e/v7x-only win.
        p = jnp.exp(s)
        p = p * pl.reciprocal(jnp.sum(p, axis=-1, keepdims=True), approx=True)
        ctx_parts.append(jnp.dot(p.astype(jnp.bfloat16), vh,
                                 preferred_element_type=jnp.float32))
    ctx = jnp.concatenate(ctx_parts, axis=-1)               # (tq, D) head-merged

    x = jnp.dot(ctx.astype(jnp.bfloat16), wff_ref[...],
                preferred_element_type=jnp.float32) + bff_ref[...]
    x = _gelu_tanh(x)
    # dropout(p=0.2) is identity in eval mode
    out_ref[0] = _layernorm(h_ref[0] + x, gamma_ref[...], beta_ref[...], 1e-10)


def attention_ffn_layernorm(q, k, v, h, mask_bias, w_ff, b_ff, gamma, beta,
                            num_heads):
    B, S, D = h.shape
    tq = _pick_tile(S, 256, 16)
    kernel = functools.partial(attn_ffn_ln_kernel, num_heads=num_heads)
    return pl.pallas_call(
        kernel,
        out_shape=jax.ShapeDtypeStruct((B, S, D), jnp.float32),
        grid=(B, S // tq),
        in_specs=[
            pl.BlockSpec((1, tq, D), lambda b, qi: (b, qi, 0)),            # Q tile
            _spec((1, S, D), lambda b, qi: (b, 0, 0), single_buffer=True), # K full
            _spec((1, S, D), lambda b, qi: (b, 0, 0), single_buffer=True), # V full
            pl.BlockSpec((1, tq, D), lambda b, qi: (b, qi, 0)),            # residual
            pl.BlockSpec((1, 1, S), lambda b, qi: (b, 0, 0)),              # mask bias
            _spec((D, D), lambda b, qi: (0, 0), single_buffer=True),       # Wff
            _spec((1, D), lambda b, qi: (0, 0), single_buffer=True),       # bff
            _spec((1, D), lambda b, qi: (0, 0), single_buffer=True),       # gamma
            _spec((1, D), lambda b, qi: (0, 0), single_buffer=True),       # beta
        ],
        out_specs=pl.BlockSpec((1, tq, D), lambda b, qi: (b, qi, 0)),
        compiler_params=pltpu.CompilerParams(
            dimension_semantics=("parallel", "parallel"),
            vmem_limit_bytes=_VMEM_LIMIT),
    )(q, k, v, h, mask_bias, w_ff, b_ff, gamma, beta)


# ---------------------------------------------------------------------------
# Kernel 4: MLM dense projection + softmax cross-entropy,
# tiled over (rows, vocab) with online-softmax accumulators. No one-hot.
# ---------------------------------------------------------------------------
def mlm_ce_kernel(x_ref, w_ref, b_ref, lab_ref, loss_ref, m_sc, l_sc, t_sc):
    j = pl.program_id(1)
    tv = w_ref.shape[1]

    @pl.when(j == 0)
    def _():
        m_sc[...] = jnp.full_like(m_sc, -jnp.inf)
        l_sc[...] = jnp.zeros_like(l_sc)
        t_sc[...] = jnp.zeros_like(t_sc)

    # x is pre-cast to bf16 outside the kernel; bias add stays f32 so the
    # -1e30 pad bias never becomes -inf.
    logits = jnp.dot(x_ref[...], w_ref[...],
                     preferred_element_type=jnp.float32) + b_ref[...]   # (tm, tv)

    # gather the target logit for rows whose label lands in this vocab tile
    col = j * tv + jax.lax.broadcasted_iota(jnp.int32, logits.shape, 1)
    hit = col == lab_ref[...]                                           # (tm, tv)
    t_sc[...] += jnp.sum(jnp.where(hit, logits, 0.0), axis=-1, keepdims=True)

    # online log-sum-exp
    m_new = jnp.maximum(m_sc[...], jnp.max(logits, axis=-1, keepdims=True))
    l_sc[...] = l_sc[...] * jnp.exp(m_sc[...] - m_new) + \
                jnp.sum(jnp.exp(logits - m_new), axis=-1, keepdims=True)
    m_sc[...] = m_new

    @pl.when(j == pl.num_programs(1) - 1)
    def _():
        loss_ref[...] = (m_sc[...] + jnp.log(l_sc[...])) - t_sc[...]


def mlm_dense_ce(x_bf16, w, b, labels):
    """Per-row cross-entropy of softmax(x @ w + b) against integer labels."""
    M, D = x_bf16.shape
    V = w.shape[1]
    tm = _pick_tile(M, 512, 8)           # larger row tile: fewer vocab-weight re-streams
    tv = V if V <= 2048 else 2048
    Vp = _round_up(V, tv)
    if Vp != V:
        # pad vocab so it tiles evenly; padded logits get -1e30 f32 bias -> exp ~ 0
        w = jnp.pad(w, ((0, 0), (0, Vp - V)))
        b = jnp.pad(b, ((0, 0), (0, Vp - V)), constant_values=-1e30)

    out = pl.pallas_call(
        mlm_ce_kernel,
        out_shape=jax.ShapeDtypeStruct((M, 1), jnp.float32),
        grid=(M // tm, Vp // tv),
        in_specs=[
            _spec((tm, D), lambda i, j: (i, 0), single_buffer=True),  # hidden rows (bf16)
            pl.BlockSpec((D, tv), lambda i, j: (0, j)),               # vocab weight tile
            pl.BlockSpec((1, tv), lambda i, j: (0, j)),               # vocab bias tile
            _spec((tm, 1), lambda i, j: (i, 0), single_buffer=True),  # int labels
        ],
        out_specs=pl.BlockSpec((tm, 1), lambda i, j: (i, 0)),
        scratch_shapes=[pltpu.VMEM((tm, 1), jnp.float32) for _ in range(3)],
        compiler_params=pltpu.CompilerParams(
            dimension_semantics=("parallel", "arbitrary"),
            vmem_limit_bytes=_VMEM_LIMIT),
    )(x_bf16, w, b, labels)
    return out  # (M, 1) per-row losses


# ---------------------------------------------------------------------------
# Parameter init (deterministic, synthetic)
# ---------------------------------------------------------------------------
def init_params(key, vocab_size, dim_model, num_layers, max_seq_length, num_heads):
    del num_heads  # weights are head-agnostic; splitting happens in-kernel

    def nxt():
        nonlocal key
        key, sub = jax.random.split(key)
        return sub

    def randn(shape, scale=0.05):
        return (scale * jax.random.normal(nxt(), shape)).astype(jnp.float32)

    params = {
        "tok_table": randn((vocab_size, dim_model)),
        "pos_table": randn((max_seq_length, dim_model)),
        "type_table": randn((vocab_size, dim_model)),   # reference uses vocab_size rows
        "emb_gamma": jnp.ones((1, dim_model), jnp.float32),
        "emb_beta": jnp.zeros((1, dim_model), jnp.float32),
        "mlm_w": randn((dim_model, vocab_size)).astype(jnp.bfloat16),
        "mlm_b": jnp.zeros((1, vocab_size), jnp.float32),
        "nsp_w": randn((dim_model, 2)),
        "nsp_b": jnp.zeros((1, 2), jnp.float32),
        "layers": [],
    }
    for _ in range(num_layers):
        w_qkv = jnp.concatenate(
            [randn((dim_model, dim_model)) for _ in range(3)], axis=1)
        params["layers"].append((
            w_qkv.astype(jnp.bfloat16),                          # fused Wqkv (D, 3D)
            jnp.zeros((1, 3 * dim_model), jnp.float32),          # fused bqkv
            randn((dim_model, dim_model)).astype(jnp.bfloat16),  # Wff (D, D)
            jnp.zeros((1, dim_model), jnp.float32),              # bff
            jnp.ones((1, dim_model), jnp.float32),               # LN gamma
            jnp.zeros((1, dim_model), jnp.float32),              # LN beta
        ))
    return params


# ---------------------------------------------------------------------------
# Full forward pass
# ---------------------------------------------------------------------------
def bert_for_pretraining(params, input_ids, attention_mask, mlm_labels,
                         next_sentence_label, token_type_ids=None, num_heads=4):
    B, S = input_ids.shape
    D = params["tok_table"].shape[1]

    # Embedding gathers (glue, plain JAX)
    tok = jnp.take(params["tok_table"], input_ids, axis=0)            # (B, S, D)
    if token_type_ids is None:
        token_type_ids = jnp.zeros((B, S), dtype=jnp.int32)
    typ = jnp.take(params["type_table"], token_type_ids, axis=0)      # (B, S, D)
    pos = params["pos_table"][:S]                                     # (S, D)

    h = embedding_layernorm(tok, typ, pos, params["emb_gamma"], params["emb_beta"])

    # additive attention bias: (1 - mask) * -10000, broadcast over heads & queries
    mask_bias = ((1.0 - attention_mask.astype(jnp.float32)) * -10000.0)[:, None, :]

    for (w_qkv, b_qkv, w_ff, b_ff, gamma, beta) in params["layers"]:
        q, k, v = qkv_projection(h, w_qkv, b_qkv)      # bf16 (B, S, D) each
        h = attention_ffn_layernorm(q, k, v, h, mask_bias,
                                    w_ff, b_ff, gamma, beta, num_heads)

    cls = h[:, 0]                                                     # (B, D)

    # MLM head: tiled dense + online-softmax CE (no one-hot), mean over all tokens.
    x = h.reshape(B * S, D).astype(jnp.bfloat16)       # pre-cast once for the MXU path
    per_row = mlm_dense_ce(x, params["mlm_w"], params["mlm_b"],
                           mlm_labels.reshape(B * S, 1).astype(jnp.int32))
    mlm_loss = jnp.mean(per_row)

    # NSP head: (B,D)x(D,2) is launch-overhead-bound as a kernel; leave to XLA.
    nsp_logits = cls @ params["nsp_w"] + params["nsp_b"]
    nsp_logp = jax.nn.log_softmax(nsp_logits, axis=-1)
    nsp_loss = -jnp.mean(jnp.take_along_axis(nsp_logp, next_sentence_label[:, None], axis=1))

    return mlm_loss + nsp_loss


# ---------------------------------------------------------------------------
if __name__ == "__main__":
    # Small config: heads=4, dim=32, layers=2, vocab=64, max_seq=16
    NUM_HEADS, DIM, LAYERS, VOCAB, MAX_SEQ = 4, 32, 2, 64, 16
    B, S = 2, 8

    _buffered_ok()   # probe pl.Buffered(1) support eagerly (outside jit tracing)

    key = jax.random.PRNGKey(0)
    k_param, k_ids, k_mlm, k_nsp = jax.random.split(key, 4)

    params = init_params(k_param, VOCAB, DIM, LAYERS, MAX_SEQ, NUM_HEADS)

    input_ids = jax.random.randint(k_ids, (B, S), 0, VOCAB, dtype=jnp.int32)
    attention_mask = jnp.ones((B, S), jnp.float32).at[1, S - 2:].set(0.0)
    mlm_labels = jax.random.randint(k_mlm, (B, S), 0, VOCAB, dtype=jnp.int32)
    next_sentence_label = jax.random.randint(k_nsp, (B,), 0, 2, dtype=jnp.int32)

    fwd = jax.jit(functools.partial(bert_for_pretraining, num_heads=NUM_HEADS))
    loss = fwd(params, input_ids, attention_mask, mlm_labels, next_sentence_label)
    loss = jax.block_until_ready(loss)
    assert jnp.isfinite(loss)
    print("KERNEL_OK")
</pallas_src>

<mosaic_0001>
module attributes {stable_mosaic.version = 11 : i64} {
  func.func @_probe(%arg0: i32, %arg1: memref<8x128xf32, #tpu.memory_space<vmem>>, %arg2: memref<8x128xf32, #tpu.memory_space<vmem>>) attributes {dimension_semantics = [#tpu.dimension_semantics<arbitrary>], iteration_bounds = array<i64: 2>, scalar_prefetch = 0 : i64, scratch_operands = 0 : i64, tpu.core_type = #tpu.core_type<tc>, window_params = [{pipeline_mode = #tpu.pipeline_mode<synchronous>, transform_indices = @transform_0, window_bounds = array<i64: 8, 128>}, {transform_indices = @transform_1, window_bounds = array<i64: 8, 128>}]} {
    %c0 = arith.constant 0 : index
    %c0_0 = arith.constant 0 : index
    %0 = vector.load %arg1[%c0, %c0_0] : memref<8x128xf32, #tpu.memory_space<vmem>>, vector<8x128xf32>
    %cst = arith.constant 1.000000e+00 : f32
    %1 = vector.broadcast %cst : f32 to vector<8x128xf32>
    %2 = arith.addf %0, %1 : vector<8x128xf32>
    %c0_1 = arith.constant 0 : index
    %c0_2 = arith.constant 0 : index
    %3 = vector.load %arg2[%c0_1, %c0_2] : memref<8x128xf32, #tpu.memory_space<vmem>>, vector<8x128xf32>
    tpu.vector_store %arg2[%c0_1, %c0_2], %2 {strides = array<i32>} : memref<8x128xf32, #tpu.memory_space<vmem>>, vector<8x128xf32>,
    return
  }
  func.func @transform_0(%arg0: i32) -> (i32, i32) {
    %c0_i32 = arith.constant 0 : i32
    %c0_i32_0 = arith.constant 0 : i32
    return %arg0, %c0_i32 : i32, i32
  }
  func.func @transform_1(%arg0: i32) -> (i32, i32) {
    %c0_i32 = arith.constant 0 : i32
    %c0_i32_0 = arith.constant 0 : i32
    return %arg0, %c0_i32 : i32, i32
  }
}

module attributes {stable_mosaic.version = 11 : i64} {
  func.func @attn_ffn_ln_kernel(%arg0: i32, %arg1: i32, %arg2: memref<1x8x32xbf16, #tpu.memory_space<vmem>>, %arg3: memref<1x8x32xbf16, #tpu.memory_space<vmem>>, %arg4: memref<1x8x32xbf16, #tpu.memory_space<vmem>>, %arg5: memref<1x8x32xf32, #tpu.memory_space<vmem>>, %arg6: memref<1x1x8xf32, #tpu.memory_space<vmem>>, %arg7: memref<32x32xbf16, #tpu.memory_space<vmem>>, %arg8: memref<1x32xf32, #tpu.memory_space<vmem>>, %arg9: memref<1x32xf32, #tpu.memory_space<vmem>>, %arg10: memref<1x32xf32, #tpu.memory_space<vmem>>, %arg11: memref<1x8x32xf32, #tpu.memory_space<vmem>>) attributes {dimension_semantics = [#tpu.dimension_semantics<parallel>, #tpu.dimension_semantics<parallel>], iteration_bounds = array<i64: 2, 1>, scalar_prefetch = 0 : i64, scratch_operands = 0 : i64, tpu.core_type = #tpu.core_type<tc>, window_params = [{transform_indices = @transform_0, window_bounds = array<i64: 1, 8, 32>}, {transform_indices = @transform_1, window_bounds = array<i64: 1, 8, 32>}, {transform_indices = @transform_2, window_bounds = array<i64: 1, 8, 32>}, {transform_indices = @transform_3, window_bounds = array<i64: 1, 8, 32>}, {transform_indices = @transform_4, window_bounds = array<i64: 1, 1, 8>}, {pipeline_mode = #tpu.pipeline_mode<synchronous>, transform_indices = @transform_5, window_bounds = array<i64: 32, 32>}, {pipeline_mode = #tpu.pipeline_mode<synchronous>, transform_indices = @transform_6, window_bounds = array<i64: 1, 32>}, {pipeline_mode = #tpu.pipeline_mode<synchronous>, transform_indices = @transform_7, window_bounds = array<i64: 1, 32>}, {pipeline_mode = #tpu.pipeline_mode<synchronous>, transform_indices = @transform_8, window_bounds = array<i64: 1, 32>}, {transform_indices = @transform_9, window_bounds = array<i64: 1, 8, 32>}]} {
    %c0 = arith.constant 0 : index
    %c0_0 = arith.constant 0 : index
    %c0_1 = arith.constant 0 : index
    %0 = vector.load %arg2[%c0, %c0_0, %c0_1] : memref<1x8x32xbf16, #tpu.memory_space<vmem>>, vector<1x8x32xbf16>
    %1 = vector.shape_cast %0 : vector<1x8x32xbf16> to vector<8x32xbf16>
    %c0_2 = arith.constant 0 : index
    %c0_3 = arith.constant 0 : index
    %c0_4 = arith.constant 0 : index
    %2 = vector.load %arg3[%c0_2, %c0_3, %c0_4] : memref<1x8x32xbf16, #tpu.memory_space<vmem>>, vector<1x8x32xbf16>
    %3 = vector.shape_cast %2 : vector<1x8x32xbf16> to vector<8x32xbf16>
    %c0_5 = arith.constant 0 : index
    %c0_6 = arith.constant 0 : index
    %c0_7 = arith.constant 0 : index
    %4 = vector.load %arg4[%c0_5, %c0_6, %c0_7] : memref<1x8x32xbf16, #tpu.memory_space<vmem>>, vector<1x8x32xbf16>
    %5 = vector.shape_cast %4 : vector<1x8x32xbf16> to vector<8x32xbf16>
    %c0_8 = arith.constant 0 : index
    %c0_9 = arith.constant 0 : index
    %c0_10 = arith.constant 0 : index
    %6 = vector.load %arg6[%c0_8, %c0_9, %c0_10] : memref<1x1x8xf32, #tpu.memory_space<vmem>>, vector<1x1x8xf32>
    %7 = vector.shape_cast %6 : vector<1x1x8xf32> to vector<1x8xf32>
    %8 = vector.extract_strided_slice %1 {offsets = [0, 0], sizes = [8, 8], strides = [1, 1]} : vector<8x32xbf16> to vector<8x8xbf16>
    %9 = vector.extract_strided_slice %3 {offsets = [0, 0], sizes = [8, 8], strides = [1, 1]} : vector<8x32xbf16> to vector<8x8xbf16>
    %10 = vector.extract_strided_slice %5 {offsets = [0, 0], sizes = [8, 8], strides = [1, 1]} : vector<8x32xbf16> to vector<8x8xbf16>
    %cst = arith.constant dense<0.000000e+00> : vector<8x8xf32>
    %11 = tpu.matmul %8, %9, %cst {dimension_numbers = #tpu.dot_dimension_numbers<[1], [1], [0], [0], [0, 0, 1, 0], [], []>} : vector<8x8xbf16>, vector<8x8xbf16>, vector<8x8xf32> -> vector<8x8xf32>
    %cst_11 = arith.constant 0.176776692 : f32
    %12 = vector.broadcast %cst_11 : f32 to vector<8x8xf32>
    %13 = arith.mulf %11, %12 : vector<8x8xf32>
    %14 = vector.broadcast %7 : vector<1x8xf32> to vector<8x8xf32>
    %15 = arith.addf %13, %14 : vector<8x8xf32>
    %cst_12 = arith.constant dense<0xFF800000> : vector<8xf32>
    %16 = vector.multi_reduction <maximumf>, %15, %cst_12 [1] : vector<8x8xf32> to vector<8xf32>
    %17 = vector.shape_cast %16 : vector<8xf32> to vector<8x1xf32>
    %18 = vector.broadcast %17 : vector<8x1xf32> to vector<8x8xf32>
    %19 = arith.subf %15, %18 : vector<8x8xf32>
    %20 = math.exp %19 : vector<8x8xf32>
    %cst_13 = arith.constant dense<0.000000e+00> : vector<8xf32>
    %21 = vector.multi_reduction <add>, %20, %cst_13 [1] : vector<8x8xf32> to vector<8xf32>
    %22 = vector.shape_cast %21 : vector<8xf32> to vector<8x1xf32>
    %23 = tpu.reciprocal %22 {approx = true} : vector<8x1xf32> -> vector<8x1xf32>
    %24 = vector.broadcast %23 : vector<8x1xf32> to vector<8x8xf32>
    %25 = arith.mulf %20, %24 : vector<8x8xf32>
    %26 = arith.truncf %25 : vector<8x8xf32> to vector<8x8xbf16>
    %cst_14 = arith.constant dense<0.000000e+00> : vector<8x8xf32>
    %27 = tpu.matmul %26, %10, %cst_14 {dimension_numbers = #tpu.dot_dimension_numbers<[1], [0], [0], [1], [0, 0, 1, 1], [], []>} : vector<8x8xbf16>, vector<8x8xbf16>, vector<8x8xf32> -> vector<8x8xf32>
    %28 = vector.extract_strided_slice %1 {offsets = [0, 8], sizes = [8, 8], strides = [1, 1]} : vector<8x32xbf16> to vector<8x8xbf16>
    %29 = vector.extract_strided_slice %3 {offsets = [0, 8], sizes = [8, 8], strides = [1, 1]} : vector<8x32xbf16> to vector<8x8xbf16>
    %30 = vector.extract_strided_slice %5 {offsets = [0, 8], sizes = [8, 8], strides = [1, 1]} : vector<8x32xbf16> to vector<8x8xbf16>
    %cst_15 = arith.constant dense<0.000000e+00> : vector<8x8xf32>
    %31 = tpu.matmul %28, %29, %cst_15 {dimension_numbers = #tpu.dot_dimension_numbers<[1], [1], [0], [0], [0, 0, 1, 0], [], []>} : vector<8x8xbf16>, vector<8x8xbf16>, vector<8x8xf32> -> vector<8x8xf32>
    %cst_16 = arith.constant 0.176776692 : f32
    %32 = vector.broadcast %cst_16 : f32 to vector<8x8xf32>
    %33 = arith.mulf %31, %32 : vector<8x8xf32>
    %34 = vector.broadcast %7 : vector<1x8xf32> to vector<8x8xf32>
    %35 = arith.addf %33, %34 : vector<8x8xf32>
    %cst_17 = arith.constant dense<0xFF800000> : vector<8xf32>
    %36 = vector.multi_reduction <maximumf>, %35, %cst_17 [1] : vector<8x8xf32> to vector<8xf32>
    %37 = vector.shape_cast %36 : vector<8xf32> to vector<8x1xf32>
    %38 = vector.broadcast %37 : vector<8x1xf32> to vector<8x8xf32>
    %39 = arith.subf %35, %38 : vector<8x8xf32>
    %40 = math.exp %39 : vector<8x8xf32>
    %cst_18 = arith.constant dense<0.000000e+00> : vector<8xf32>
    %41 = vector.multi_reduction <add>, %40, %cst_18 [1] : vector<8x8xf32> to vector<8xf32>
    %42 = vector.shape_cast %41 : vector<8xf32> to vector<8x1xf32>
    %43 = tpu.reciprocal %42 {approx = true} : vector<8x1xf32> -> vector<8x1xf32>
    %44 = vector.broadcast %43 : vector<8x1xf32> to vector<8x8xf32>
    %45 = arith.mulf %40, %44 : vector<8x8xf32>
    %46 = arith.truncf %45 : vector<8x8xf32> to vector<8x8xbf16>
    %cst_19 = arith.constant dense<0.000000e+00> : vector<8x8xf32>
    %47 = tpu.matmul %46, %30, %cst_19 {dimension_numbers = #tpu.dot_dimension_numbers<[1], [0], [0], [1], [0, 0, 1, 1], [], []>} : vector<8x8xbf16>, vector<8x8xbf16>, vector<8x8xf32> -> vector<8x8xf32>
    %48 = vector.extract_strided_slice %1 {offsets = [0, 16], sizes = [8, 8], strides = [1, 1]} : vector<8x32xbf16> to vector<8x8xbf16>
    %49 = vector.extract_strided_slice %3 {offsets = [0, 16], sizes = [8, 8], strides = [1, 1]} : vector<8x32xbf16> to vector<8x8xbf16>
    %50 = vector.extract_strided_slice %5 {offsets = [0, 16], sizes = [8, 8], strides = [1, 1]} : vector<8x32xbf16> to vector<8x8xbf16>
    %cst_20 = arith.constant dense<0.000000e+00> : vector<8x8xf32>
    %51 = tpu.matmul %48, %49, %cst_20 {dimension_numbers = #tpu.dot_dimension_numbers<[1], [1], [0], [0], [0, 0, 1, 0], [], []>} : vector<8x8xbf16>, vector<8x8xbf16>, vector<8x8xf32> -> vector<8x8xf32>
    %cst_21 = arith.constant 0.176776692 : f32
    %52 = vector.broadcast %cst_21 : f32 to vector<8x8xf32>
    %53 = arith.mulf %51, %52 : vector<8x8xf32>
    %54 = vector.broadcast %7 : vector<1x8xf32> to vector<8x8xf32>
    %55 = arith.addf %53, %54 : vector<8x8xf32>
    %cst_22 = arith.constant dense<0xFF800000> : vector<8xf32>
    %56 = vector.multi_reduction <maximumf>, %55, %cst_22 [1] : vector<8x8xf32> to vector<8xf32>
    %57 = vector.shape_cast %56 : vector<8xf32> to vector<8x1xf32>
    %58 = vector.broadcast %57 : vector<8x1xf32> to vector<8x8xf32>
    %59 = arith.subf %55, %58 : vector<8x8xf32>
    %60 = math.exp %59 : vector<8x8xf32>
    %cst_23 = arith.constant dense<0.000000e+00> : vector<8xf32>
    %61 = vector.multi_reduction <add>, %60, %cst_23 [1] : vector<8x8xf32> to vector<8xf32>
    %62 = vector.shape_cast %61 : vector<8xf32> to vector<8x1xf32>
    %63 = tpu.reciprocal %62 {approx = true} : vector<8x1xf32> -> vector<8x1xf32>
    %64 = vector.broadcast %63 : vector<8x1xf32> to vector<8x8xf32>
    %65 = arith.mulf %60, %64 : vector<8x8xf32>
    %66 = arith.truncf %65 : vector<8x8xf32> to vector<8x8xbf16>
    %cst_24 = arith.constant dense<0.000000e+00> : vector<8x8xf32>
    %67 = tpu.matmul %66, %50, %cst_24 {dimension_numbers = #tpu.dot_dimension_numbers<[1], [0], [0], [1], [0, 0, 1, 1], [], []>} : vector<8x8xbf16>, vector<8x8xbf16>, vector<8x8xf32> -> vector<8x8xf32>
    %68 = vector.extract_strided_slice %1 {offsets = [0, 24], sizes = [8, 8], strides = [1, 1]} : vector<8x32xbf16> to vector<8x8xbf16>
    %69 = vector.extract_strided_slice %3 {offsets = [0, 24], sizes = [8, 8], strides = [1, 1]} : vector<8x32xbf16> to vector<8x8xbf16>
    %70 = vector.extract_strided_slice %5 {offsets = [0, 24], sizes = [8, 8], strides = [1, 1]} : vector<8x32xbf16> to vector<8x8xbf16>
    %cst_25 = arith.constant dense<0.000000e+00> : vector<8x8xf32>
    %71 = tpu.matmul %68, %69, %cst_25 {dimension_numbers = #tpu.dot_dimension_numbers<[1], [1], [0], [0], [0, 0, 1, 0], [], []>} : vector<8x8xbf16>, vector<8x8xbf16>, vector<8x8xf32> -> vector<8x8xf32>
    %cst_26 = arith.constant 0.176776692 : f32
    %72 = vector.broadcast %cst_26 : f32 to vector<8x8xf32>
    %73 = arith.mulf %71, %72 : vector<8x8xf32>
    %74 = vector.broadcast %7 : vector<1x8xf32> to vector<8x8xf32>
    %75 = arith.addf %73, %74 : vector<8x8xf32>
    %cst_27 = arith.constant dense<0xFF800000> : vector<8xf32>
    %76 = vector.multi_reduction <maximumf>, %75, %cst_27 [1] : vector<8x8xf32> to vector<8xf32>
    %77 = vector.shape_cast %76 : vector<8xf32> to vector<8x1xf32>
    %78 = vector.broadcast %77 : vector<8x1xf32> to vector<8x8xf32>
    %79 = arith.subf %75, %78 : vector<8x8xf32>
    %80 = math.exp %79 : vector<8x8xf32>
    %cst_28 = arith.constant dense<0.000000e+00> : vector<8xf32>
    %81 = vector.multi_reduction <add>, %80, %cst_28 [1] : vector<8x8xf32> to vector<8xf32>
    %82 = vector.shape_cast %81 : vector<8xf32> to vector<8x1xf32>
    %83 = tpu.reciprocal %82 {approx = true} : vector<8x1xf32> -> vector<8x1xf32>
    %84 = vector.broadcast %83 : vector<8x1xf32> to vector<8x8xf32>
    %85 = arith.mulf %80, %84 : vector<8x8xf32>
    %86 = arith.truncf %85 : vector<8x8xf32> to vector<8x8xbf16>
    %cst_29 = arith.constant dense<0.000000e+00> : vector<8x8xf32>
    %87 = tpu.matmul %86, %70, %cst_29 {dimension_numbers = #tpu.dot_dimension_numbers<[1], [0], [0], [1], [0, 0, 1, 1], [], []>} : vector<8x8xbf16>, vector<8x8xbf16>, vector<8x8xf32> -> vector<8x8xf32>
    %88 = tpu.concatenate %27, %47, %67, %87 in 1 : vector<8x8xf32>, vector<8x8xf32>, vector<8x8xf32>, vector<8x8xf32> -> vector<8x32xf32>
    %89 = arith.truncf %88 : vector<8x32xf32> to vector<8x32xbf16>
    %c0_30 = arith.constant 0 : index
    %c0_31 = arith.constant 0 : index
    %90 = vector.load %arg7[%c0_30, %c0_31] : memref<32x32xbf16, #tpu.memory_space<vmem>>, vector<32x32xbf16>
    %cst_32 = arith.constant dense<0.000000e+00> : vector<8x32xf32>
    %91 = tpu.matmul %89, %90, %cst_32 {dimension_numbers = #tpu.dot_dimension_numbers<[1], [0], [0], [1], [0, 0, 1, 1], [], []>} : vector<8x32xbf16>, vector<32x32xbf16>, vector<8x32xf32> -> vector<8x32xf32>
    %c0_33 = arith.constant 0 : index
    %c0_34 = arith.constant 0 : index
    %92 = vector.load %arg8[%c0_33, %c0_34] : memref<1x32xf32, #tpu.memory_space<vmem>>, vector<1x32xf32>
    %93 = vector.broadcast %92 : vector<1x32xf32> to vector<8x32xf32>
    %94 = arith.addf %91, %93 : vector<8x32xf32>
    %cst_35 = arith.constant 5.000000e-01 : f32
    %95 = vector.broadcast %cst_35 : f32 to vector<8x32xf32>
    %96 = arith.mulf %95, %94 : vector<8x32xf32>
    %cst_36 = arith.constant 4.471500e-02 : f32
    %97 = vector.broadcast %cst_36 : f32 to vector<8x32xf32>
    %98 = arith.mulf %97, %94 : vector<8x32xf32>
    %99 = arith.mulf %98, %94 : vector<8x32xf32>
    %100 = arith.mulf %99, %94 : vector<8x32xf32>
    %101 = arith.addf %94, %100 : vector<8x32xf32>
    %cst_37 = arith.constant 0.797884583 : f32
    %102 = vector.broadcast %cst_37 : f32 to vector<8x32xf32>
    %103 = arith.mulf %102, %101 : vector<8x32xf32>
    %104 = math.tanh %103 : vector<8x32xf32>
    %cst_38 = arith.constant 1.000000e+00 : f32
    %105 = vector.broadcast %cst_38 : f32 to vector<8x32xf32>
    %106 = arith.addf %105, %104 : vector<8x32xf32>
    %107 = arith.mulf %96, %106 : vector<8x32xf32>
    %c0_39 = arith.constant 0 : index
    %c0_40 = arith.constant 0 : index
    %c0_41 = arith.constant 0 : index
    %108 = vector.load %arg5[%c0_39, %c0_40, %c0_41] : memref<1x8x32xf32, #tpu.memory_space<vmem>>, vector<1x8x32xf32>
    %109 = vector.shape_cast %108 : vector<1x8x32xf32> to vector<8x32xf32>
    %110 = arith.addf %109, %107 : vector<8x32xf32>
    %c0_42 = arith.constant 0 : index
    %c0_43 = arith.constant 0 : index
    %111 = vector.load %arg9[%c0_42, %c0_43] : memref<1x32xf32, #tpu.memory_space<vmem>>, vector<1x32xf32>
    %c0_44 = arith.constant 0 : index
    %c0_45 = arith.constant 0 : index
    %112 = vector.load %arg10[%c0_44, %c0_45] : memref<1x32xf32, #tpu.memory_space<vmem>>, vector<1x32xf32>
    %cst_46 = arith.constant dense<0.000000e+00> : vector<8xf32>
    %113 = vector.multi_reduction <add>, %110, %cst_46 [1] : vector<8x32xf32> to vector<8xf32>
    %114 = vector.shape_cast %113 : vector<8xf32> to vector<8x1xf32>
    %cst_47 = arith.constant 3.200000e+01 : f32
    %115 = vector.broadcast %cst_47 : f32 to vector<8x1xf32>
    %116 = arith.divf %114, %115 : vector<8x1xf32>
    %117 = vector.broadcast %116 : vector<8x1xf32> to vector<8x32xf32>
    %118 = arith.subf %110, %117 : vector<8x32xf32>
    %119 = arith.mulf %118, %118 : vector<8x32xf32>
    %cst_48 = arith.constant dense<0.000000e+00> : vector<8xf32>
    %120 = vector.multi_reduction <add>, %119, %cst_48 [1] : vector<8x32xf32> to vector<8xf32>
    %121 = vector.shape_cast %120 : vector<8xf32> to vector<8x1xf32>
    %cst_49 = arith.constant 3.200000e+01 : f32
    %122 = vector.broadcast %cst_49 : f32 to vector<8x1xf32>
    %123 = arith.divf %121, %122 : vector<8x1xf32>
    %124 = vector.broadcast %116 : vector<8x1xf32> to vector<8x32xf32>
    %125 = arith.subf %110, %124 : vector<8x32xf32>
    %cst_50 = arith.constant 1.000000e-10 : f32
    %126 = vector.broadcast %cst_50 : f32 to vector<8x1xf32>
    %127 = arith.addf %123, %126 : vector<8x1xf32>
    %128 = math.rsqrt %127 : vector<8x1xf32>
    %129 = vector.broadcast %128 : vector<8x1xf32> to vector<8x32xf32>
    %130 = arith.mulf %125, %129 : vector<8x32xf32>
    %131 = vector.broadcast %111 : vector<1x32xf32> to vector<8x32xf32>
    %132 = arith.mulf %130, %131 : vector<8x32xf32>
    %133 = vector.broadcast %112 : vector<1x32xf32> to vector<8x32xf32>
    %134 = arith.addf %132, %133 : vector<8x32xf32>
    %c0_51 = arith.constant 0 : index
    %c0_52 = arith.constant 0 : index
    %c0_53 = arith.constant 0 : index
    %135 = vector.load %arg11[%c0_51, %c0_52, %c0_53] : memref<1x8x32xf32, #tpu.memory_space<vmem>>, vector<1x8x32xf32>
    %136 = vector.shape_cast %135 : vector<1x8x32xf32> to vector<8x32xf32>
    %137 = vector.shape_cast %134 : vector<8x32xf32> to vector<1x8x32xf32>
    tpu.vector_store %arg11[%c0_51, %c0_52, %c0_53], %137 {strides = array<i32>} : memref<1x8x32xf32, #tpu.memory_space<vmem>>, vector<1x8x32xf32>,
    return
  }
  func.func @transform_0(%arg0: i32, %arg1: i32) -> (i32, i32, i32) {
    %c0_i32 = arith.constant 0 : i32
    %c0_i32_0 = arith.constant 0 : i32
    return %arg0, %arg1, %c0_i32 : i32, i32, i32
  }
  func.func @transform_1(%arg0: i32, %arg1: i32) -> (i32, i32, i32) {
    %c0_i32 = arith.constant 0 : i32
    %c0_i32_0 = arith.constant 0 : i32
    %c0_i32_1 = arith.constant 0 : i32
    return %arg0, %c0_i32, %c0_i32_0 : i32, i32, i32
  }
  func.func @transform_2(%arg0: i32, %arg1: i32) -> (i32, i32, i32) {
    %c0_i32 = arith.constant 0 : i32
    %c0_i32_0 = arith.constant 0 : i32
    %c0_i32_1 = arith.constant 0 : i32
    return %arg0, %c0_i32, %c0_i32_0 : i32, i32, i32
  }
  func.func @transform_3(%arg0: i32, %arg1: i32) -> (i32, i32, i32) {
    %c0_i32 = arith.constant 0 : i32
    %c0_i32_0 = arith.constant 0 : i32
    return %arg0, %arg1, %c0_i32 : i32, i32, i32
  }
  func.func @transform_4(%arg0: i32, %arg1: i32) -> (i32, i32, i32) {
    %c0_i32 = arith.constant 0 : i32
    %c0_i32_0 = arith.constant 0 : i32
    %c0_i32_1 = arith.constant 0 : i32
    return %arg0, %c0_i32, %c0_i32_0 : i32, i32, i32
  }
  func.func @transform_5(%arg0: i32, %arg1: i32) -> (i32, i32) {
    %c0_i32 = arith.constant 0 : i32
    %c0_i32_0 = arith.constant 0 : i32
    %c0_i32_1 = arith.constant 0 : i32
    return %c0_i32, %c0_i32_0 : i32, i32
  }
  func.func @transform_6(%arg0: i32, %arg1: i32) -> (i32, i32) {
    %c0_i32 = arith.constant 0 : i32
    %c0_i32_0 = arith.constant 0 : i32
    %c0_i32_1 = arith.constant 0 : i32
    return %c0_i32, %c0_i32_0 : i32, i32
  }
  func.func @transform_7(%arg0: i32, %arg1: i32) -> (i32, i32) {
    %c0_i32 = arith.constant 0 : i32
    %c0_i32_0 = arith.constant 0 : i32
    %c0_i32_1 = arith.constant 0 : i32
    return %c0_i32, %c0_i32_0 : i32, i32
  }
  func.func @transform_8(%arg0: i32, %arg1: i32) -> (i32, i32) {
    %c0_i32 = arith.constant 0 : i32
    %c0_i32_0 = arith.constant 0 : i32
    %c0_i32_1 = arith.constant 0 : i32
    return %c0_i32, %c0_i32_0 : i32, i32
  }
  func.func @transform_9(%arg0: i32, %arg1: i32) -> (i32, i32, i32) {
    %c0_i32 = arith.constant 0 : i32
    %c0_i32_0 = arith.constant 0 : i32
    return %arg0, %arg1, %c0_i32 : i32, i32, i32
  }
}

module attributes {stable_mosaic.version = 11 : i64} {
  func.func @qkv_proj_kernel(%arg0: i32, %arg1: i32, %arg2: memref<1x8x32xf32, #tpu.memory_space<vmem>>, %arg3: memref<32x96xbf16, #tpu.memory_space<vmem>>, %arg4: memref<1x96xf32, #tpu.memory_space<vmem>>, %arg5: memref<1x8x32xbf16, #tpu.memory_space<vmem>>, %arg6: memref<1x8x32xbf16, #tpu.memory_space<vmem>>, %arg7: memref<1x8x32xbf16, #tpu.memory_space<vmem>>) attributes {dimension_semantics = [#tpu.dimension_semantics<parallel>, #tpu.dimension_semantics<parallel>], iteration_bounds = array<i64: 2, 1>, scalar_prefetch = 0 : i64, scratch_operands = 0 : i64, tpu.core_type = #tpu.core_type<tc>, window_params = [{transform_indices = @transform_0, window_bounds = array<i64: 1, 8, 32>}, {pipeline_mode = #tpu.pipeline_mode<synchronous>, transform_indices = @transform_1, window_bounds = array<i64: 32, 96>}, {pipeline_mode = #tpu.pipeline_mode<synchronous>, transform_indices = @transform_2, window_bounds = array<i64: 1, 96>}, {transform_indices = @transform_3, window_bounds = array<i64: 1, 8, 32>}, {transform_indices = @transform_4, window_bounds = array<i64: 1, 8, 32>}, {transform_indices = @transform_5, window_bounds = array<i64: 1, 8, 32>}]} {
    %c0 = arith.constant 0 : index
    %c0_0 = arith.constant 0 : index
    %c0_1 = arith.constant 0 : index
    %0 = vector.load %arg2[%c0, %c0_0, %c0_1] : memref<1x8x32xf32, #tpu.memory_space<vmem>>, vector<1x8x32xf32>
    %1 = vector.shape_cast %0 : vector<1x8x32xf32> to vector<8x32xf32>
    %2 = arith.truncf %1 : vector<8x32xf32> to vector<8x32xbf16>
    %c0_2 = arith.constant 0 : index
    %c0_3 = arith.constant 0 : index
    %3 = vector.load %arg3[%c0_2, %c0_3] : memref<32x96xbf16, #tpu.memory_space<vmem>>, vector<32x96xbf16>
    %cst = arith.constant dense<0.000000e+00> : vector<8x96xf32>
    %4 = tpu.matmul %2, %3, %cst {dimension_numbers = #tpu.dot_dimension_numbers<[1], [0], [0], [1], [0, 0, 1, 1], [], []>} : vector<8x32xbf16>, vector<32x96xbf16>, vector<8x96xf32> -> vector<8x96xf32>
    %c0_4 = arith.constant 0 : index
    %c0_5 = arith.constant 0 : index
    %5 = vector.load %arg4[%c0_4, %c0_5] : memref<1x96xf32, #tpu.memory_space<vmem>>, vector<1x96xf32>
    %6 = vector.broadcast %5 : vector<1x96xf32> to vector<8x96xf32>
    %7 = arith.addf %4, %6 : vector<8x96xf32>
    %8 = arith.truncf %7 : vector<8x96xf32> to vector<8x96xbf16>
    %9 = vector.extract_strided_slice %8 {offsets = [0, 0], sizes = [8, 32], strides = [1, 1]} : vector<8x96xbf16> to vector<8x32xbf16>
    %c0_6 = arith.constant 0 : index
    %c0_7 = arith.constant 0 : index
    %c0_8 = arith.constant 0 : index
    %10 = vector.load %arg5[%c0_6, %c0_7, %c0_8] : memref<1x8x32xbf16, #tpu.memory_space<vmem>>, vector<1x8x32xbf16>
    %11 = vector.shape_cast %10 : vector<1x8x32xbf16> to vector<8x32xbf16>
    %12 = vector.shape_cast %9 : vector<8x32xbf16> to vector<1x8x32xbf16>
    tpu.vector_store %arg5[%c0_6, %c0_7, %c0_8], %12 {strides = array<i32>} : memref<1x8x32xbf16, #tpu.memory_space<vmem>>, vector<1x8x32xbf16>,
    %13 = vector.extract_strided_slice %8 {offsets = [0, 32], sizes = [8, 32], strides = [1, 1]} : vector<8x96xbf16> to vector<8x32xbf16>
    %c0_9 = arith.constant 0 : index
    %c0_10 = arith.constant 0 : index
    %c0_11 = arith.constant 0 : index
    %14 = vector.load %arg6[%c0_9, %c0_10, %c0_11] : memref<1x8x32xbf16, #tpu.memory_space<vmem>>, vector<1x8x32xbf16>
    %15 = vector.shape_cast %14 : vector<1x8x32xbf16> to vector<8x32xbf16>
    %16 = vector.shape_cast %13 : vector<8x32xbf16> to vector<1x8x32xbf16>
    tpu.vector_store %arg6[%c0_9, %c0_10, %c0_11], %16 {strides = array<i32>} : memref<1x8x32xbf16, #tpu.memory_space<vmem>>, vector<1x8x32xbf16>,
    %17 = vector.extract_strided_slice %8 {offsets = [0, 64], sizes = [8, 32], strides = [1, 1]} : vector<8x96xbf16> to vector<8x32xbf16>
    %c0_12 = arith.constant 0 : index
    %c0_13 = arith.constant 0 : index
    %c0_14 = arith.constant 0 : index
    %18 = vector.load %arg7[%c0_12, %c0_13, %c0_14] : memref<1x8x32xbf16, #tpu.memory_space<vmem>>, vector<1x8x32xbf16>
    %19 = vector.shape_cast %18 : vector<1x8x32xbf16> to vector<8x32xbf16>
    %20 = vector.shape_cast %17 : vector<8x32xbf16> to vector<1x8x32xbf16>
    tpu.vector_store %arg7[%c0_12, %c0_13, %c0_14], %20 {strides = array<i32>} : memref<1x8x32xbf16, #tpu.memory_space<vmem>>, vector<1x8x32xbf16>,
    return
  }
  func.func @transform_0(%arg0: i32, %arg1: i32) -> (i32, i32, i32) {
    %c0_i32 = arith.constant 0 : i32
    %c0_i32_0 = arith.constant 0 : i32
    return %arg0, %arg1, %c0_i32 : i32, i32, i32
  }
  func.func @transform_1(%arg0: i32, %arg1: i32) -> (i32, i32) {
    %c0_i32 = arith.constant 0 : i32
    %c0_i32_0 = arith.constant 0 : i32
    %c0_i32_1 = arith.constant 0 : i32
    return %c0_i32, %c0_i32_0 : i32, i32
  }
  func.func @transform_2(%arg0: i32, %arg1: i32) -> (i32, i32) {
    %c0_i32 = arith.constant 0 : i32
    %c0_i32_0 = arith.constant 0 : i32
    %c0_i32_1 = arith.constant 0 : i32
    return %c0_i32, %c0_i32_0 : i32, i32
  }
  func.func @transform_3(%arg0: i32, %arg1: i32) -> (i32, i32, i32) {
    %c0_i32 = arith.constant 0 : i32
    %c0_i32_0 = arith.constant 0 : i32
    return %arg0, %arg1, %c0_i32 : i32, i32, i32
  }
  func.func @transform_4(%arg0: i32, %arg1: i32) -> (i32, i32, i32) {
    %c0_i32 = arith.constant 0 : i32
    %c0_i32_0 = arith.constant 0 : i32
    return %arg0, %arg1, %c0_i32 : i32, i32, i32
  }
  func.func @transform_5(%arg0: i32, %arg1: i32) -> (i32, i32, i32) {
    %c0_i32 = arith.constant 0 : i32
    %c0_i32_0 = arith.constant 0 : i32
    return %arg0, %arg1, %c0_i32 : i32, i32, i32
  }
}

module attributes {stable_mosaic.version = 11 : i64} {
  func.func @embedding_ln_kernel(%arg0: i32, %arg1: i32, %arg2: memref<1x8x32xf32, #tpu.memory_space<vmem>>, %arg3: memref<1x8x32xf32, #tpu.memory_space<vmem>>, %arg4: memref<8x32xf32, #tpu.memory_space<vmem>>, %arg5: memref<1x32xf32, #tpu.memory_space<vmem>>, %arg6: memref<1x32xf32, #tpu.memory_space<vmem>>, %arg7: memref<1x8x32xf32, #tpu.memory_space<vmem>>) attributes {dimension_semantics = [#tpu.dimension_semantics<parallel>, #tpu.dimension_semantics<parallel>], iteration_bounds = array<i64: 2, 1>, scalar_prefetch = 0 : i64, scratch_operands = 0 : i64, tpu.core_type = #tpu.core_type<tc>, window_params = [{transform_indices = @transform_0, window_bounds = array<i64: 1, 8, 32>}, {transform_indices = @transform_1, window_bounds = array<i64: 1, 8, 32>}, {transform_indices = @transform_2, window_bounds = array<i64: 8, 32>}, {pipeline_mode = #tpu.pipeline_mode<synchronous>, transform_indices = @transform_3, window_bounds = array<i64: 1, 32>}, {pipeline_mode = #tpu.pipeline_mode<synchronous>, transform_indices = @transform_4, window_bounds = array<i64: 1, 32>}, {transform_indices = @transform_5, window_bounds = array<i64: 1, 8, 32>}]} {
    %c0 = arith.constant 0 : index
    %c0_0 = arith.constant 0 : index
    %c0_1 = arith.constant 0 : index
    %0 = vector.load %arg2[%c0, %c0_0, %c0_1] : memref<1x8x32xf32, #tpu.memory_space<vmem>>, vector<1x8x32xf32>
    %1 = vector.shape_cast %0 : vector<1x8x32xf32> to vector<8x32xf32>
    %c0_2 = arith.constant 0 : index
    %c0_3 = arith.constant 0 : index
    %c0_4 = arith.constant 0 : index
    %2 = vector.load %arg3[%c0_2, %c0_3, %c0_4] : memref<1x8x32xf32, #tpu.memory_space<vmem>>, vector<1x8x32xf32>
    %3 = vector.shape_cast %2 : vector<1x8x32xf32> to vector<8x32xf32>
    %4 = arith.addf %1, %3 : vector<8x32xf32>
    %c0_5 = arith.constant 0 : index
    %c0_6 = arith.constant 0 : index
    %5 = vector.load %arg4[%c0_5, %c0_6] : memref<8x32xf32, #tpu.memory_space<vmem>>, vector<8x32xf32>
    %6 = arith.addf %4, %5 : vector<8x32xf32>
    %c0_7 = arith.constant 0 : index
    %c0_8 = arith.constant 0 : index
    %7 = vector.load %arg5[%c0_7, %c0_8] : memref<1x32xf32, #tpu.memory_space<vmem>>, vector<1x32xf32>
    %c0_9 = arith.constant 0 : index
    %c0_10 = arith.constant 0 : index
    %8 = vector.load %arg6[%c0_9, %c0_10] : memref<1x32xf32, #tpu.memory_space<vmem>>, vector<1x32xf32>
    %cst = arith.constant dense<0.000000e+00> : vector<8xf32>
    %9 = vector.multi_reduction <add>, %6, %cst [1] : vector<8x32xf32> to vector<8xf32>
    %10 = vector.shape_cast %9 : vector<8xf32> to vector<8x1xf32>
    %cst_11 = arith.constant 3.200000e+01 : f32
    %11 = vector.broadcast %cst_11 : f32 to vector<8x1xf32>
    %12 = arith.divf %10, %11 : vector<8x1xf32>
    %13 = vector.broadcast %12 : vector<8x1xf32> to vector<8x32xf32>
    %14 = arith.subf %6, %13 : vector<8x32xf32>
    %15 = arith.mulf %14, %14 : vector<8x32xf32>
    %cst_12 = arith.constant dense<0.000000e+00> : vector<8xf32>
    %16 = vector.multi_reduction <add>, %15, %cst_12 [1] : vector<8x32xf32> to vector<8xf32>
    %17 = vector.shape_cast %16 : vector<8xf32> to vector<8x1xf32>
    %cst_13 = arith.constant 3.200000e+01 : f32
    %18 = vector.broadcast %cst_13 : f32 to vector<8x1xf32>
    %19 = arith.divf %17, %18 : vector<8x1xf32>
    %20 = vector.broadcast %12 : vector<8x1xf32> to vector<8x32xf32>
    %21 = arith.subf %6, %20 : vector<8x32xf32>
    %cst_14 = arith.constant 9.99999996E-13 : f32
    %22 = vector.broadcast %cst_14 : f32 to vector<8x1xf32>
    %23 = arith.addf %19, %22 : vector<8x1xf32>
    %24 = math.rsqrt %23 : vector<8x1xf32>
    %25 = vector.broadcast %24 : vector<8x1xf32> to vector<8x32xf32>
    %26 = arith.mulf %21, %25 : vector<8x32xf32>
    %27 = vector.broadcast %7 : vector<1x32xf32> to vector<8x32xf32>
    %28 = arith.mulf %26, %27 : vector<8x32xf32>
    %29 = vector.broadcast %8 : vector<1x32xf32> to vector<8x32xf32>
    %30 = arith.addf %28, %29 : vector<8x32xf32>
    %c0_15 = arith.constant 0 : index
    %c0_16 = arith.constant 0 : index
    %c0_17 = arith.constant 0 : index
    %31 = vector.load %arg7[%c0_15, %c0_16, %c0_17] : memref<1x8x32xf32, #tpu.memory_space<vmem>>, vector<1x8x32xf32>
    %32 = vector.shape_cast %31 : vector<1x8x32xf32> to vector<8x32xf32>
    %33 = vector.shape_cast %30 : vector<8x32xf32> to vector<1x8x32xf32>
    tpu.vector_store %arg7[%c0_15, %c0_16, %c0_17], %33 {strides = array<i32>} : memref<1x8x32xf32, #tpu.memory_space<vmem>>, vector<1x8x32xf32>,
    return
  }
  func.func @transform_0(%arg0: i32, %arg1: i32) -> (i32, i32, i32) {
    %c0_i32 = arith.constant 0 : i32
    %c0_i32_0 = arith.constant 0 : i32
    return %arg0, %arg1, %c0_i32 : i32, i32, i32
  }
  func.func @transform_1(%arg0: i32, %arg1: i32) -> (i32, i32, i32) {
    %c0_i32 = arith.constant 0 : i32
    %c0_i32_0 = arith.constant 0 : i32
    return %arg0, %arg1, %c0_i32 : i32, i32, i32
  }
  func.func @transform_2(%arg0: i32, %arg1: i32) -> (i32, i32) {
    %c0_i32 = arith.constant 0 : i32
    %c0_i32_0 = arith.constant 0 : i32
    return %arg1, %c0_i32 : i32, i32
  }
  func.func @transform_3(%arg0: i32, %arg1: i32) -> (i32, i32) {
    %c0_i32 = arith.constant 0 : i32
    %c0_i32_0 = arith.constant 0 : i32
    %c0_i32_1 = arith.constant 0 : i32
    return %c0_i32, %c0_i32_0 : i32, i32
  }
  func.func @transform_4(%arg0: i32, %arg1: i32) -> (i32, i32) {
    %c0_i32 = arith.constant 0 : i32
    %c0_i32_0 = arith.constant 0 : i32
    %c0_i32_1 = arith.constant 0 : i32
    return %c0_i32, %c0_i32_0 : i32, i32
  }
  func.func @transform_5(%arg0: i32, %arg1: i32) -> (i32, i32, i32) {
    %c0_i32 = arith.constant 0 : i32
    %c0_i32_0 = arith.constant 0 : i32
    return %arg0, %arg1, %c0_i32 : i32, i32, i32
  }
}

module attributes {stable_mosaic.version = 11 : i64} {
  func.func @mlm_ce_kernel(%arg0: i32, %arg1: i32, %arg2: memref<16x32xbf16, #tpu.memory_space<vmem>>, %arg3: memref<32x64xbf16, #tpu.memory_space<vmem>>, %arg4: memref<1x64xf32, #tpu.memory_space<vmem>>, %arg5: memref<16x1xi32, #tpu.memory_space<vmem>>, %arg6: memref<16x1xf32, #tpu.memory_space<vmem>>, %arg7: memref<16x1xf32, #tpu.memory_space<vmem>>, %arg8: memref<16x1xf32, #tpu.memory_space<vmem>>, %arg9: memref<16x1xf32, #tpu.memory_space<vmem>>) attributes {dimension_semantics = [#tpu.dimension_semantics<parallel>, #tpu.dimension_semantics<arbitrary>], iteration_bounds = array<i64: 1, 1>, scalar_prefetch = 0 : i64, scratch_operands = 3 : i64, tpu.core_type = #tpu.core_type<tc>, window_params = [{transform_indices = @transform_0, window_bounds = array<i64: 16, 32>}, {transform_indices = @transform_1, window_bounds = array<i64: 32, 64>}, {transform_indices = @transform_2, window_bounds = array<i64: 1, 64>}, {transform_indices = @transform_3, window_bounds = array<i64: 16, 1>}, {transform_indices = @transform_4, window_bounds = array<i64: 16, 1>}]} {
    %c0_i32 = arith.constant 0 : i32
    %0 = arith.cmpi eq, %arg1, %c0_i32 : i32
    %1 = arith.extui %0 : i1 to i32
    %c0_i32_0 = arith.constant 0 : i32
    %2 = arith.cmpi ne, %1, %c0_i32_0 : i32
    scf.if %2 {
      %cst_28 = arith.constant 0xFF800000 : f32
      %43 = vector.broadcast %cst_28 : f32 to vector<16x1xf32>
      %c0_29 = arith.constant 0 : index
      %c0_30 = arith.constant 0 : index
      %44 = vector.load %arg7[%c0_29, %c0_30] : memref<16x1xf32, #tpu.memory_space<vmem>>, vector<16x1xf32>
      tpu.vector_store %arg7[%c0_29, %c0_30], %43 {strides = array<i32>} : memref<16x1xf32, #tpu.memory_space<vmem>>, vector<16x1xf32>,
      %cst_31 = arith.constant 0.000000e+00 : f32
      %45 = vector.broadcast %cst_31 : f32 to vector<16x1xf32>
      %c0_32 = arith.constant 0 : index
      %c0_33 = arith.constant 0 : index
      %46 = vector.load %arg8[%c0_32, %c0_33] : memref<16x1xf32, #tpu.memory_space<vmem>>, vector<16x1xf32>
      tpu.vector_store %arg8[%c0_32, %c0_33], %45 {strides = array<i32>} : memref<16x1xf32, #tpu.memory_space<vmem>>, vector<16x1xf32>,
      %cst_34 = arith.constant 0.000000e+00 : f32
      %47 = vector.broadcast %cst_34 : f32 to vector<16x1xf32>
      %c0_35 = arith.constant 0 : index
      %c0_36 = arith.constant 0 : index
      %48 = vector.load %arg9[%c0_35, %c0_36] : memref<16x1xf32, #tpu.memory_space<vmem>>, vector<16x1xf32>
      tpu.vector_store %arg9[%c0_35, %c0_36], %47 {strides = array<i32>} : memref<16x1xf32, #tpu.memory_space<vmem>>, vector<16x1xf32>,
    } else {
    }
    %c0 = arith.constant 0 : index
    %c0_1 = arith.constant 0 : index
    %3 = vector.load %arg2[%c0, %c0_1] : memref<16x32xbf16, #tpu.memory_space<vmem>>, vector<16x32xbf16>
    %c0_2 = arith.constant 0 : index
    %c0_3 = arith.constant 0 : index
    %4 = vector.load %arg3[%c0_2, %c0_3] : memref<32x64xbf16, #tpu.memory_space<vmem>>, vector<32x64xbf16>
    %cst = arith.constant dense<0.000000e+00> : vector<16x64xf32>
    %5 = tpu.matmul %3, %4, %cst {dimension_numbers = #tpu.dot_dimension_numbers<[1], [0], [0], [1], [0, 0, 1, 1], [], []>} : vector<16x32xbf16>, vector<32x64xbf16>, vector<16x64xf32> -> vector<16x64xf32>
    %c0_4 = arith.constant 0 : index
    %c0_5 = arith.constant 0 : index
    %6 = vector.load %arg4[%c0_4, %c0_5] : memref<1x64xf32, #tpu.memory_space<vmem>>, vector<1x64xf32>
    %7 = vector.broadcast %6 : vector<1x64xf32> to vector<16x64xf32>
    %8 = arith.addf %5, %7 : vector<16x64xf32>
    %c64_i32 = arith.constant 64 : i32
    %9 = arith.muli %arg1, %c64_i32 : i32
    %10 = tpu.iota {dimensions = array<i32: 1>} : vector<16x64xi32>
    %11 = vector.broadcast %9 : i32 to vector<16x64xi32>
    %12 = arith.addi %11, %10 : vector<16x64xi32>
    %c0_6 = arith.constant 0 : index
    %c0_7 = arith.constant 0 : index
    %13 = vector.load %arg5[%c0_6, %c0_7] : memref<16x1xi32, #tpu.memory_space<vmem>>, vector<16x1xi32>
    %14 = vector.broadcast %13 : vector<16x1xi32> to vector<16x64xi32>
    %15 = arith.cmpi eq, %12, %14 : vector<16x64xi32>
    %c0_8 = arith.constant 0 : index
    %c0_9 = arith.constant 0 : index
    %16 = vector.load %arg9[%c0_8, %c0_9] : memref<16x1xf32, #tpu.memory_space<vmem>>, vector<16x1xf32>
    %cst_10 = arith.constant 0.000000e+00 : f32
    %17 = vector.broadcast %cst_10 : f32 to vector<16x64xf32>
    %18 = arith.select %15, %8, %17 : vector<16x64xi1>, vector<16x64xf32>
    %cst_11 = arith.constant dense<0.000000e+00> : vector<16xf32>
    %19 = vector.multi_reduction <add>, %18, %cst_11 [1] : vector<16x64xf32> to vector<16xf32>
    %20 = vector.shape_cast %19 : vector<16xf32> to vector<16x1xf32>
    %21 = arith.addf %16, %20 : vector<16x1xf32>
    %c0_12 = arith.constant 0 : index
    %c0_13 = arith.constant 0 : index
    %22 = vector.load %arg9[%c0_12, %c0_13] : memref<16x1xf32, #tpu.memory_space<vmem>>, vector<16x1xf32>
    tpu.vector_store %arg9[%c0_12, %c0_13], %21 {strides = array<i32>} : memref<16x1xf32, #tpu.memory_space<vmem>>, vector<16x1xf32>,
    %c0_14 = arith.constant 0 : index
    %c0_15 = arith.constant 0 : index
    %23 = vector.load %arg7[%c0_14, %c0_15] : memref<16x1xf32, #tpu.memory_space<vmem>>, vector<16x1xf32>
    %cst_16 = arith.constant dense<0xFF800000> : vector<16xf32>
    %24 = vector.multi_reduction <maximumf>, %8, %cst_16 [1] : vector<16x64xf32> to vector<16xf32>
    %25 = vector.shape_cast %24 : vector<16xf32> to vector<16x1xf32>
    %26 = arith.maximumf %23, %25 : vector<16x1xf32>
    %c0_17 = arith.constant 0 : index
    %c0_18 = arith.constant 0 : index
    %27 = vector.load %arg8[%c0_17, %c0_18] : memref<16x1xf32, #tpu.memory_space<vmem>>, vector<16x1xf32>
    %c0_19 = arith.constant 0 : index
    %c0_20 = arith.constant 0 : index
    %28 = vector.load %arg7[%c0_19, %c0_20] : memref<16x1xf32, #tpu.memory_space<vmem>>, vector<16x1xf32>
    %29 = arith.subf %28, %26 : vector<16x1xf32>
    %30 = math.exp %29 : vector<16x1xf32>
    %31 = arith.mulf %27, %30 : vector<16x1xf32>
    %32 = vector.broadcast %26 : vector<16x1xf32> to vector<16x64xf32>
    %33 = arith.subf %8, %32 : vector<16x64xf32>
    %34 = math.exp %33 : vector<16x64xf32>
    %cst_21 = arith.constant dense<0.000000e+00> : vector<16xf32>
    %35 = vector.multi_reduction <add>, %34, %cst_21 [1] : vector<16x64xf32> to vector<16xf32>
    %36 = vector.shape_cast %35 : vector<16xf32> to vector<16x1xf32>
    %37 = arith.addf %31, %36 : vector<16x1xf32>
    %c0_22 = arith.constant 0 : index
    %c0_23 = arith.constant 0 : index
    %38 = vector.load %arg8[%c0_22, %c0_23] : memref<16x1xf32, #tpu.memory_space<vmem>>, vector<16x1xf32>
    tpu.vector_store %arg8[%c0_22, %c0_23], %37 {strides = array<i32>} : memref<16x1xf32, #tpu.memory_space<vmem>>, vector<16x1xf32>,
    %c0_24 = arith.constant 0 : index
    %c0_25 = arith.constant 0 : index
    %39 = vector.load %arg7[%c0_24, %c0_25] : memref<16x1xf32, #tpu.memory_space<vmem>>, vector<16x1xf32>
    tpu.vector_store %arg7[%c0_24, %c0_25], %26 {strides = array<i32>} : memref<16x1xf32, #tpu.memory_space<vmem>>, vector<16x1xf32>,
    %c0_i32_26 = arith.constant 0 : i32
    %40 = arith.cmpi eq, %arg1, %c0_i32_26 : i32
    %41 = arith.extui %40 : i1 to i32
    %c0_i32_27 = arith.constant 0 : i32
    %42 = arith.cmpi ne, %41, %c0_i32_27 : i32
    scf.if %42 {
      %c0_28 = arith.constant 0 : index
      %c0_29 = arith.constant 0 : index
      %43 = vector.load %arg7[%c0_28, %c0_29] : memref<16x1xf32, #tpu.memory_space<vmem>>, vector<16x1xf32>
      %c0_30 = arith.constant 0 : index
      %c0_31 = arith.constant 0 : index
      %44 = vector.load %arg8[%c0_30, %c0_31] : memref<16x1xf32, #tpu.memory_space<vmem>>, vector<16x1xf32>
      %45 = math.log %44 : vector<16x1xf32>
      %46 = arith.addf %43, %45 : vector<16x1xf32>
      %c0_32 = arith.constant 0 : index
      %c0_33 = arith.constant 0 : index
      %47 = vector.load %arg9[%c0_32, %c0_33] : memref<16x1xf32, #tpu.memory_space<vmem>>, vector<16x1xf32>
      %48 = arith.subf %46, %47 : vector<16x1xf32>
      %c0_34 = arith.constant 0 : index
      %c0_35 = arith.constant 0 : index
      %49 = vector.load %arg6[%c0_34, %c0_35] : memref<16x1xf32, #tpu.memory_space<vmem>>, vector<16x1xf32>
      tpu.vector_store %arg6[%c0_34, %c0_35], %48 {strides = array<i32>} : memref<16x1xf32, #tpu.memory_space<vmem>>, vector<16x1xf32>,
    } else {
    }
    return
  }
  func.func @transform_0(%arg0: i32, %arg1: i32) -> (i32, i32) {
    %c0_i32 = arith.constant 0 : i32
    %c0_i32_0 = arith.constant 0 : i32
    return %arg0, %c0_i32 : i32, i32
  }
  func.func @transform_1(%arg0: i32, %arg1: i32) -> (i32, i32) {
    %c0_i32 = arith.constant 0 : i32
    %c0_i32_0 = arith.constant 0 : i32
    return %c0_i32, %arg1 : i32, i32
  }
  func.func @transform_2(%arg0: i32, %arg1: i32) -> (i32, i32) {
    %c0_i32 = arith.constant 0 : i32
    %c0_i32_0 = arith.constant 0 : i32
    return %c0_i32, %arg1 : i32, i32
  }
  func.func @transform_3(%arg0: i32, %arg1: i32) -> (i32, i32) {
    %c0_i32 = arith.constant 0 : i32
    %c0_i32_0 = arith.constant 0 : i32
    return %arg0, %c0_i32 : i32, i32
  }
  func.func @transform_4(%arg0: i32, %arg1: i32) -> (i32, i32) {
    %c0_i32 = arith.constant 0 : i32
    %c0_i32_0 = arith.constant 0 : i32
    return %arg0, %c0_i32 : i32, i32
  }
}

</mosaic_0001>

<bundles_post_ra>
// kernel: tpu_custom_call.1
= control target key start
LH: loop header
LB: loop body
LE: loop exit
PB: predicated region body
PF: predicated region fallthrough
CT: control target
= control target key end

     0   :  { %6 = vsyncpa [#allocation3], 0  ;;  %s499_s0 = inlined_call_operand.hbm [shape: f32[16,128], index: 0, kind: input, shape index: {}]   ;;  %s500_s1 = inlined_call_operand.hbm [shape: f32[16,128], index: 1, kind: output, shape index: {}]  }
   0x1   :  { %7 = vsyncpa [#allocation4], 0 }
   0x2   :  { %9 = vsyncpa [#allocation4 + $0x1], 0  ;;  %s358_s6 = smov 0   ;;  %s360_s7 = smov 0  }
   0x3   :  { %s362_s8 = smov 0   ;;  %s364_s9 = smov 0  }
   0x4 LB: > { %s379_s10 = sadd.s32 4294967295, %s344_s9   ;;  %s193_s11 = sadd.s32 4294967294, %s344_s9   ;;  %s344_s9 = sphi %s364_s9, %s517_s9   ;;  %s340_s8 = sphi %s362_s8, %s516_s8   ;;  %s336_s7 = sphi %s360_s7, %s515_s7   ;;  %s332_s6 = sphi %s358_s6, %s514_s6  }
   0x5   : > { %s383_s12 = sadd.s32 1, %s344_s9   ;;  %s22_s13 = sadd.s32 1, %s340_s8 }
   0x6   : > { %s19_s14 = ssub.s32 %s344_s9, %s383_s12  ;;  %p35_p0 = scmp.ne.s32.totalorder %s336_s7, %s332_s6 }
   0x7   : > { %p20_p1 = scmp.eq.s32.totalorder %s19_s14, 0  ;;  %p36_p2 = scmp.eq.s32.totalorder %s379_s10, 0 }
   0x8   : > { %p58_p3 = scmp.ne.s32.totalorder %s340_s8, %s336_s7  ;;  %p59_p4 = scmp.eq.s32.totalorder %s379_s10, 1 }
   0x9   : > { %s395_s15 = scalar_select %p20_p1, %s340_s8, %s22_s13  }
   0xa   : > { %p397_p5 = por %p59_p4, %p58_p3  ;;  %p65_p6 = scmp.eq.s32.totalorder %s193_s11, 1 }
   0xb   : > { %p194_p7 = scmp.ge.s32.totalorder %s344_s9, 1  ;;  %p402_p8 = por %p36_p2, %p35_p0 }
   0xc   : > { %s505_s16 = scalar_select %p397_p5, 1, 0 }
   0xd   : > { %s506_s17 = scalar_select %p402_p8, 1, 0 }
   0xe   : > { %p72_p9 = scmp.lt.s32.totalorder %s344_s9, 3  ;;  %p407_p10 = por %p65_p6, %p35_p0 }
   0xf   : > { %s195_s19 = sshll.u32 %s379_s10, 7  ;;  %s346_s21 = smov [#allocation2]  }
  0x10   : > { %s507_s18 = scalar_select %p407_p10, 1, 0 }
  0x11   : > { %p412_p11 = pnand %p194_p7, %p72_p9  ;;  %s87_s22 = sshll.u32 %s346_s21, 4  ;;  %s88_s22 = int_to_ptr.vmem [resolvable:$true] %s87_s22 }
  0x12   : > { %s85_s25 = scalar_lea.hbm %s499_s0, %s195_s19  ;;  %s253_s30 = scalar_lea.hbm %s499_s0, 256 }
  0x13   : > { %s508_s20 = scalar_select %p412_p11, 1, 0 }
  0x14   : > { %p206_p12 = pneg %p412_p11  ;;  %s248_s27 = scalar_lea.hbm %s85_s25, 128 }
  0x15   : > { %p249_p0 = scmp.ne.s32.totalorder %s85_s25, %s248_s27  ;;  %p254_p4 = scmp.lt.u32.totalorder %s85_s25, %s499_s0 }
  0x16   : > { %p425_p13 = pnand %p206_p12, %p402_p8  ;;  %p255_p6 = scmp.lt.u32.totalorder %s253_s30, %s248_s27 }
  0x17   : > { %p257_p9 = scmp.lt.u32.totalorder %s248_s27, %s85_s25 }
  0x18   : > { %p250_p1 = pneg %p425_p13  ;;  %p256_p7 = por %p255_p6, %p254_p4 }
  0x1a   : > { %p251_p2 = pnand %p250_p1, %p249_p0  ;;  %p258_p12 = por %p257_p9, %p256_p7 }
  0x1c   : > { %p252_p3 = pneg %p251_p2 }
  0x1e   : > { %p259_p10 = pnand %p258_p12, %p252_p3 }
  0x20   : > { %262 = shalt.err (!%p259_p10)
}
  0x21   : > { %s263_s4 = scalar_lea.vmem %s88_s22, 128  ;;  %p271_p8 = scmp.lt.s32.totalorder %s88_s22, %s88_s22 }
  0x22   : > { %p264_p5 = scmp.ne.s32.totalorder %s88_s22, %s263_s4  ;;  %p272_p11 = scmp.lt.s32.totalorder %s263_s4, %s263_s4 }
  0x24   : > { %p266_p0 = pnand %p264_p5, %p250_p1  ;;  %p273_p4 = por %p272_p11, %p271_p8 }
  0x26   : > { %p267_p2 = pneg %p266_p0 }
  0x28   : > { %p274_p6 = pnand %p273_p4, %p267_p2 }
  0x2a   : > { %277 = shalt.err (!%p274_p6)
}
  0x2b   : > { %209 = dma.hbm_to_vmem [thread:$0]  (!%p425_p13), %s85_s25, 128, %s88_s22, [#allocation3]  }
  0x2c   : > { %p510_p7 = scmp.ne.s32.totalorder %s508_s20, 0 }
  0x2d   : > { %p511_p10 = scmp.ne.s32.totalorder (!%p510_p7), %s506_s17, 0 }
  0x2e   : > { %100 = sbr.rel (%p510_p7) target bundleno = 80 (0x50), region = 24 }
  0x35   : > { %323 = dma.done.wait (%p511_p10), [#allocation3], 128  }
  0x36   : > { %325 = vsyncadd (%p511_p10), [#allocation3], 4294967168  ;;  %s112_s5 = sand.u32 1, %s336_s7   ;;  %v115_v0 = vld [vmem:[#allocation2] sm:$0xff]  ;;  %s457_s20 = scalar_lea.hbm %s500_s1, %s195_s19 }
  0x37   : > { %s197_s11 = sshll.u32 %s112_s5, 3  ;;  %v116_v1 = vadd.f32 1.0, %v115_v0  ;;  %s119_s17 = scalar_lea.sflag [#allocation4], %s112_s5 }
  0x38   : > { %s114_s13 = scalar_lea.vmem [#allocation5], %s197_s11  ;;  %p512_p8 = scmp.ne.s32.totalorder %s505_s16, 0 }
  0x39   : > { %s132_s14 = sshll.u32 %s114_s13, 4  ;;  %117 = vst [vmem:[%s114_s13] sm:$0xff] %v116_v1  ;;  %s347_s24 = smov [#allocation5]   ;;  %s459_s14 = int_to_ptr.vmem [resolvable:$true] %s132_s14 }
  0x3a   : > { %s278_s23 = scalar_lea.vmem %s459_s14, 128  ;;  %s282_s10 = sshll.u32 %s347_s24, 4  ;;  %s283_s10 = int_to_ptr.vmem [resolvable:$false] %s282_s10 }
  0x3b   : > { %p279_p5 = scmp.ne.s32.totalorder %s459_s14, %s278_s23  ;;  %s284_s25 = scalar_lea.vmem %s283_s10, 256 }
  0x3c   : > { %p285_p1 = scmp.lt.s32.totalorder %s459_s14, %s283_s10  ;;  %p286_p3 = scmp.lt.s32.totalorder %s284_s25, %s278_s23 }
  0x3d   : > { %p280_p11 = pnand %p279_p5, %p512_p8 }
  0x3e   : > { %p287_p9 = por %p286_p3, %p285_p1 }
  0x3f   : > { %p281_p13 = pneg %p280_p11 }
  0x41   : > { %p288_p12 = pnand %p287_p9, %p281_p13 }
  0x43   : > { %291 = shalt.err (!%p288_p12)
}
  0x44   : > { %s292_s19 = scalar_lea.hbm %s457_s20, 128  ;;  %s296_s28 = scalar_lea.hbm %s500_s1, 256 }
  0x45   : > { %p293_p0 = scmp.ne.s32.totalorder %s457_s20, %s292_s19  ;;  %p297_p6 = scmp.lt.u32.totalorder %s457_s20, %s500_s1 }
  0x46   : > { %p298_p7 = scmp.lt.u32.totalorder %s296_s28, %s292_s19  ;;  %p300_p5 = scmp.lt.u32.totalorder %s292_s19, %s457_s20 }
  0x47   : > { %p294_p2 = pnand %p293_p0, %p512_p8 }
  0x48   : > { %p299_p10 = por %p298_p7, %p297_p6 }
  0x49   : > { %p295_p4 = pneg %p294_p2 }
  0x4a   : > { %p301_p11 = por %p300_p5, %p299_p10 }
  0x4c   : > { %p302_p13 = pnand %p301_p11, %p295_p4 }
  0x4e   : > { %305 = shalt.err (!%p302_p13)
}
  0x4f   : > { %204 = dma.vmem_to_hbm [thread:$0]  (%p512_p8), %s459_s14, 128, %s457_s20, %s119_s17  }
  0x50 PF: > { %p214_p1 = scmp.ge.s32.totalorder %s344_s9, 2  ;;  %s144_s2 = sand.u32 1, %s332_s6  }
  0x51   : > { %p513_p3 = scmp.ne.s32.totalorder %s507_s18, 0  ;;  %s145_s3 = scalar_lea.sflag [#allocation4], %s144_s2 }
  0x53   : > { %p211_p9 = pnand %p214_p1, %p513_p3 }
  0x55   : > { %327 = dma.done.wait (!%p211_p9), %s145_s3, 128  }
  0x56   : > { %329 = vsyncadd (!%p211_p9), %s145_s3, 4294967168  ;;  %p12_p12 = scmp.ge.s32.totalorder %s383_s12, 4   ;;  %s514_s6 = smov %s336_s7 }
  0x57   : > { %s515_s7 = smov %s340_s8  ;;  %s516_s8 = smov %s395_s15 }
  0x58   : > { %s517_s9 = smov %s383_s12  ;;  %14 = sbr.rel (!%p12_p12) target bundleno = 4 (0x4), region = 62 }
  0x5f   :  { %150 = vsyncpa [#allocation3], 1 }
  0x60   :  { %152 = vsyncpa [#allocation3 + $0x1], 1 }
  0x61   :  { %153 = vsyncpa [#allocation4], 1 }
  0x62   :  { %155 = vsyncpa [#allocation4 + $0x1], 1 }

// kernel: bert_for_pretraining.7
= control target key start
LH: loop header
LB: loop body
LE: loop exit
PB: predicated region body
PF: predicated region fallthrough
CT: control target
= control target key end

     0   :  { %s644_s18 = smov 0   ;;  %s646_s19 = smov 0   ;;  %s692_s0 = inlined_call_operand.vmem [shape: f32[2,8,32], index: 0, kind: input, shape index: {}]   ;;  %s693_s1 = inlined_call_operand.vmem [shape: bf16[32,96], index: 1, kind: input, shape index: {}]   ;;  %s694_s2 = inlined_call_operand.vmem [shape: f32[1,96], index: 2, kind: input, shape index: {}]   ;;  %s695_s3 = inlined_call_operand.vmem [shape: bf16[2,8,32], index: 3, kind: output, shape index: {0}]   ;;  %s696_s4 = inlined_call_operand.vmem [shape: bf16[2,8,32], index: 4, kind: output, shape index: {1}]   ;;  %s697_s5 = inlined_call_operand.vmem [shape: bf16[2,8,32], index: 5, kind: output, shape index: {2}]  }
   0x1   :  { %s648_s20 = smov 0  }
   0x2 LB: > { %s28_s21 = sadd.s32 1, %s604_s19  ;;  %p532_p0 = scmp.ge.s32.totalorder %s608_s20, 1  ;;  %s608_s20 = sphi %s648_s20, %s16_s20   ;;  %s604_s19 = sphi %s646_s19, %s699_s19   ;;  %s600_s18 = sphi %s644_s18, %s698_s18  }
   0x3   : > { %p30_p1 = scmp.ge.s32.totalorder %s28_s21, 2  ;;  %p214_p2 = scmp.lt.s32.totalorder %s608_s20, 3 }
   0x5   : > { %s701_s21 = smov (%p30_p1, %s28_s21), 0  ;;  %p215_p3 = pnand %p532_p0, %p214_p2 }
   0x6   : > { %v584_v0 = vld [vmem:[%s693_s1] sm:$0xff] (!%p215_p3)   ;;  %v610_v1 = vmov (!%p215_p3), 0.0   ;;  %v585_v2 = vld [vmem:[%s693_s1 + $0x8] sm:$0xff] (!%p215_p3)   ;;  %vm611_vm0 = vmmov (!%p215_p3), 0   ;;  %p260_p4 = scmp.lt.s32.totalorder (!%p215_p3), %s600_s18, 1  ;;  %vm314_vm1 = vcmask (!%p215_p3), 261120  }
   0x7   : > { %218 = sbr.rel (%p215_p3) target bundleno = 356 (0x164), region = 32  ;;  %548 = vmatprep.subr.bf16.mxu0 (!%p215_p3), %v610_v1  ;;  %552 = vmatprep.mubr.msk.bf16.mxu0 (!%p215_p3), %vm611_vm0, %v610_v1  ;;  %v537_v5 = vld [vmem:[%s694_s2] ss:$0 sm:$0xff] (!%p215_p3)  ;;  %vm359_vm2 = vcmask (!%p215_p3), 257024   ;;  %s612_s11 = smov (!%p215_p3), 96  }
   0x8   : > { %549 = vmatpush3.bf16.msra.mxu0 (!%p215_p3), %v584_v0  ;;  %s613_s12 = smov (!%p215_p3), 64  }
   0x9   : > { %550 = vmatprep.subr.bf16.mxu0 (!%p215_p3), %v610_v1 }
   0xc   : > { %551 = vmatpush3.bf16.msra.mxu0 (!%p215_p3), %v585_v2 }
   0xe   : > { %s703_s18 = smov (!%p260_p4, %s600_s18), 1 }
   0xf   : > { %s533_s26 = sshll.u32 %s703_s18, 3  ;;  %s534_s7 = sshll.u32 %s703_s18, 2 }
  0x10   : > { %s266_s29 = scalar_lea.vmem %s692_s0, %s533_s26  ;;  %s273_s10 = scalar_lea.vmem %s695_s3, %s534_s7 }
  0x11   : > { %v289_v3 = vld [vmem:[%s266_s29] sm:$0xff]  ;;  %s280_s15 = scalar_lea.vmem %s696_s4, %s534_s7  ;;  %s287_s18 = scalar_lea.vmem %s697_s5, %s534_s7 }
  0x12   : > { %v290_v4 = vpack.c.bf16 %v289_v3, %v289_v3 }
  0x14   : > { %553 = vmatmul.mubr.msk.bf16.vlgmr.msra.gmra.mrb[0].mxu0 %vm314_vm1, %v290_v4 }
  0xe7   : > { %v352_v6 = vpop.f32.mrb[0].mxu0 }
  0xe8   : > { %v353_v7 = vadd.f32 %v537_v5, %v352_v6  ;;  %v554_v8 = vpop.f32.mrb[1].mxu0 }
  0xe9   : > { %v355_v9 = vpop.f32.mrb[2].mxu0 }
  0xea   : > { %v358_v10 = vpack.c.bf16 %v353_v7, %v353_v7  ;;  %v555_v11 = vpop.f32.mrb[3].mxu0 }
  0xec   : > { %364 = vrot.lane.b32.xlu0 %v358_v10, %s612_s11  ;;  %360 = vst.msk [vmem:[%s273_s10] sm:$0xf] %vm359_vm2, %v358_v10 }
  0xf0   : > { %368 = vrot.lane.b32.xlu0 %v358_v10, %s613_s12 }
 0x15e   : > { %v365_v12 = vpop.permute.xlu0 %364 }
 0x15f   : > { %367 = vst.msk [vmem:[%s280_s15] sm:$0xf] %vm359_vm2, %v365_v12 }
 0x162   : > { %v369_v13 = vpop.permute.xlu0 %368 }
 0x163   : > { %371 = vst.msk [vmem:[%s287_s18] sm:$0xf] %vm359_vm2, %v369_v13 }
 0x164 PF: > { %s16_s20 = sadd.s32 1, %s608_s20   ;;  %s698_s18 = smov %s604_s19 }
 0x165   : > { %p13_p5 = scmp.ge.s32.totalorder %s16_s20, 4   ;;  %s699_s19 = smov %s701_s21 }
 0x167   :  { %15 = sbr.rel (!%p13_p5) target bundleno = 2 (0x2), region = 86 }

// kernel: bert_for_pretraining.8
= control target key start
LH: loop header
LB: loop body
LE: loop exit
PB: predicated region body
PF: predicated region fallthrough
CT: control target
= control target key end

     0   :  { %s1392_s30 = smov 0   ;;  %s1394_s10 = smov 0   ;;  %s1542_s0 = inlined_call_operand.vmem [shape: bf16[2,8,32], index: 0, kind: input, shape index: {}]   ;;  %s1543_s1 = inlined_call_operand.vmem [shape: bf16[2,8,32], index: 1, kind: input, shape index: {}]   ;;  %s1544_s2 = inlined_call_operand.vmem [shape: bf16[2,8,32], index: 2, kind: input, shape index: {}]   ;;  %s1545_s3 = inlined_call_operand.vmem [shape: f32[2,8,32], index: 3, kind: input, shape index: {}]   ;;  %s1546_s4 = inlined_call_operand.vmem [shape: f32[2,1,8], index: 4, kind: input, shape index: {}]   ;;  %s1547_s5 = inlined_call_operand.vmem [shape: bf16[32,32], index: 5, kind: input, shape index: {}]   ;;  %s1548_s6 = inlined_call_operand.vmem [shape: f32[1,32], index: 6, kind: input, shape index: {}]   ;;  %s1549_s7 = inlined_call_operand.vmem [shape: f32[1,32], index: 7, kind: input, shape index: {}]   ;;  %s1550_s8 = inlined_call_operand.vmem [shape: f32[1,32], index: 8, kind: input, shape index: {}]   ;;  %s1551_s9 = inlined_call_operand.vmem [shape: f32[2,8,32], index: 9, kind: output, shape index: {}]  }
   0x1   :  { %s1396_s11 = smov 0  }
   0x2 LB: > { %s31_s12 = sadd.s32 1, %s1328_s10  ;;  %p1152_p0 = scmp.ge.s32.totalorder %s1332_s11, 1  ;;  %s1332_s11 = sphi %s1396_s11, %s19_s11   ;;  %s1328_s10 = sphi %s1394_s10, %s1553_s10   ;;  %s1324_s30 = sphi %s1392_s30, %s1552_s30  }
   0x3   : > { %p33_p1 = scmp.ge.s32.totalorder %s31_s12, 2  ;;  %p345_p2 = scmp.lt.s32.totalorder %s1332_s11, 3 }
   0x5   : > { %s1555_s12 = smov (%p33_p1, %s31_s12), 0  ;;  %p346_p3 = pnand %p1152_p0, %p345_p2 }
   0x6   : > { %p403_p4 = scmp.lt.s32.totalorder (!%p346_p3), %s1324_s30, 1  ;;  %v1334_v0 = vmov (!%p346_p3), 0.0   ;;  %vm1335_vm0 = vmmov (!%p346_p3), 0   ;;  %vm440_vm1 = vcmask (!%p346_p3), 64512   ;;  %s1336_s23 = smov (!%p346_p3), 120   ;;  %vm510_vm2 = vcmask (!%p346_p3), 1043456  }
   0x7   : > { %349 = sbr.rel (%p346_p3) target bundleno = 2036 (0x7f4), region = 56  ;;  %1197 = vmatprep.subr.bf16.mxu0 (!%p346_p3), %v1334_v0  ;;  %1199 = vmatprep.mubr.msk.bf16.mxu0 (!%p346_p3), %vm1335_vm0, %v1334_v0  ;;  %s1337_s24 = smov (!%p346_p3), 112   ;;  %vm912_vm3 = vcmask (!%p346_p3), 130048   ;;  %vm914_vm4 = vcmask (!%p346_p3), 195584   ;;  %vm940_vm5 = vcmask (!%p346_p3), 261120  }
   0x8   : > { %1203 = vmatprep.subr.bf16.mxu1 (!%p346_p3), %v1334_v0  ;;  %1205 = vmatprep.mubr.msk.bf16.mxu1 (!%p346_p3), %vm1335_vm0, %v1334_v0  ;;  %s1338_s25 = smov (!%p346_p3), 104   ;;  %s1340_s17 = smov (!%p346_p3), 16  }
   0x9   : > { %s1341_s18 = smov (!%p346_p3), 24  }
   0xe   : > { %s1557_s30 = smov (!%p403_p4, %s1324_s30), 1 }
   0xf   : > { %s1419_s13 = sshll.u32 %s1557_s30, 2  ;;  %s427_s22 = scalar_lea.vmem %s1546_s4, %s1557_s30 }
  0x10   : > { %s413_s16 = scalar_lea.vmem %s1543_s1, %s1419_s13  ;;  %s409_s19 = scalar_lea.vmem %s1542_s0, %s1419_s13  ;;  %v1438_v5 = vld [vmem:[%s427_s22] ss:$0 sm:$0xff] }
  0x11   : > { %v437_v1 = vld [vmem:[%s413_s16] sm:$0xf]  ;;  %s417_s28 = scalar_lea.vmem %s1544_s2, %s1419_s13  ;;  %s1339_s16 = smov 8  }
  0x12   : > { %v445_v2 = vsel %vm440_vm1, %v437_v1, 0  ;;  %v436_v3 = vld [vmem:[%s409_s19] sm:$0xf]  ;;  %v1162_v12 = vcombine.low %v437_v1, %v437_v1  ;;  %s1156_s21 = sshll.u32 %s1557_s30, 3 }
  0x13   : > { %1198 = vmatpush3.bf16.xpose.msra.mxu0 %v445_v2  ;;  %v1161_v13 = vcombine.low %v436_v3, %v436_v3  ;;  %v1452_v19 = vld [vmem:[%s417_s28] sm:$0xf]  ;;  %s434_s13 = scalar_lea.vmem %s1551_s9, %s1156_s21 }
  0x14   : > { %1215 = vmatprep.subr.bf16.mxu0 %v1334_v0  ;;  %562 = vrot.lane.b32.xlu1 %v1162_v12, %s1336_s23  ;;  %v512_v20 = vsel %vm510_vm2, %v1452_v19, 0 }
  0x15   : > { %1204 = vmatpush3.bf16.msra.mxu1 %v512_v20 }
  0x16   : > { %1209 = vmatprep.subr.bf16.mxu1 %v1334_v0 }
  0x18   : > { %557 = vrot.lane.b32.xlu1 %v1161_v13, %s1336_s23 }
  0x1a   : > { %1200 = vmatmul.mubr.msk.bf16.vlgmr.msra.gmra.mrb[0].mxu0 %vm440_vm1, %v436_v3 }
  0x1b   : > { %1217 = vmatprep.mubr.msk.bf16.mxu0 %vm1335_vm0, %v1334_v0 }
  0x1c   : > { %675 = vrot.lane.b32.xlu1 %v1161_v13, %s1337_s24 }
  0x20   : > { %789 = vrot.lane.b32.xlu1 %v1162_v12, %s1338_s25 }
  0x24   : > { %787 = vrot.lane.b32.xlu1 %v1161_v13, %s1338_s25 }
  0x86   : > { %v563_v23 = vpop.permute.xlu1 %562 }
  0x87   : > { %v568_v25 = vsel %vm440_vm1, %v563_v23, 0 }
  0x8a   : > { %v558_v27 = vpop.permute.xlu1 %557 }
  0x8e   : > { %v676_v29 = vpop.permute.xlu1 %675 }
  0x92   : > { %v790_v31 = vpop.permute.xlu1 %789 }
  0x93   : > { %v795_v32 = vsel %vm440_vm1, %v790_v31, 0  ;;  %v1289_v31 = vld [vmem:[%s1547_s5 + $0x8] sm:$0xff]  }
  0x96   : > { %v788_v33 = vpop.permute.xlu1 %787 }
  0xed   : > { %v481_v4 = vpop.f32.mrb[0].mxu0 }
  0xee   : > { %v487_v6 = vmul.f32 0.17677669, %v481_v4  ;;  %v1201_v7 = vpop.f32.mrb[1].mxu0 }
  0xef   : > { %v484_v8 = vpop.f32.mrb[2].mxu0 }
  0xf0   : > { %v1202_v9 = vpop.f32.mrb[3].mxu0  ;;  %v494_v10 = vadd.f32 %v1438_v5, %v487_v6 }
  0xf2   : > { %v495_v11 = vsel %vm440_vm1, %v494_v10, -inf }
  0xf3   : > { %496 = vmax.xlane.f32.xlu0 %v495_v11 }
 0x180   : > { %v497_v14 = vpop.xlane.xlu0 %496 }
 0x181   : > { %v498_v15 = vsub.f32 %v494_v10, %v497_v14 }
 0x183   : > { %v499_v16 = vmul.f32 1.442695, %v498_v15 }
 0x185   : > { %1290 = vpow2.f32 %v499_v16 }
 0x18f   : > { %v1291_v17 = vpop.eup %1290 }
 0x190   : > { %v501_v18 = vsel %vm440_vm1, %v1291_v17, 0.0 }
 0x191   : > { %502 = vadd.xlane.f32.xlu0 %v501_v18 }
 0x1a7   : > { %677 = vrot.lane.b32.xlu0 %v1162_v12, %s1337_s24 }
 0x21e   : > { %v503_v21 = vpop.xlane.xlu0 %502 }
 0x21f   : > { %1292 = vrcp.f32 %v503_v21 }
 0x222   : > { %v678_v28 = vpop.permute.xlu0 %677 }
 0x223   : > { %v683_v30 = vsel %vm440_vm1, %v678_v28, 0 }
 0x229   : > { %v1293_v22 = vpop.eup %1292 }
 0x22a   : > { %v505_v24 = vmul.f32 %v1293_v22, %v1291_v17 }
 0x22c   : > { %v506_v26 = vpack.c.bf16 %v505_v24, %v505_v24 }
 0x22e   : > { %1206 = vmatmul.mubr.msk.bf16.vlgmr.msra.gmra.mrb[0].mxu1 %vm440_vm1, %v506_v26 }
 0x22f   : > { %1210 = vmatpush3.bf16.xpose.msra.mxu1 %v568_v25  ;;  %1211 = vmatprep.mubr.msk.bf16.mxu1 %vm1335_vm0, %v1334_v0 }
 0x230   : > { %1221 = vmatprep.subr.bf16.mxu1 %v1334_v0 }
 0x236   : > { %1212 = vmatmul.mubr.msk.bf16.vlgmr.msra.gmra.mrb[4].mxu1 %vm440_vm1, %v558_v27 }
 0x237   : > { %1222 = vmatpush3.bf16.xpose.msra.mxu1 %v683_v30  ;;  %1223 = vmatprep.mubr.msk.bf16.mxu1 %vm1335_vm0, %v1334_v0  ;;  %v1288_v30 = vld [vmem:[%s1547_s5] sm:$0xff]  }
 0x238   : > { %1233 = vmatprep.subr.bf16.mxu1 %v1334_v0 }
 0x23e   : > { %1224 = vmatmul.mubr.msk.bf16.vlgmr.msra.gmra.mrb[8].mxu1 %vm440_vm1, %v676_v29 }
 0x23f   : > { %1234 = vmatpush3.bf16.xpose.msra.mxu1 %v795_v32  ;;  %1235 = vmatprep.mubr.msk.bf16.mxu1 %vm1335_vm0, %v1334_v0 }
 0x240   : > { %1245 = vmatprep.subr.bf16.mxu1 %v1334_v0 }
 0x246   : > { %1236 = vmatmul.mubr.msk.bf16.vlgmr.msra.gmra.mrb[12].mxu1 %vm440_vm1, %v788_v33 }
 0x247   : > { %1249 = vmatprep.mubr.msk.bf16.mxu1 %vm1335_vm0, %v1334_v0  ;;  %1246 = vmatpush3.bf16.msra.mxu1 %v1288_v30 }
 0x248   : > { %1247 = vmatprep.subr.bf16.mxu1 %v1334_v0 }
 0x24b   : > { %1248 = vmatpush3.bf16.msra.mxu1 %v1289_v31 }
 0x301   : > { %v1476_v34 = vpop.f32.mrb[0].mxu1 }
 0x302   : > { %v1207_v35 = vpop.f32.mrb[1].mxu1 }
 0x303   : > { %v551_v36 = vpop.f32.mrb[2].mxu1 }
 0x304   : > { %v1208_v37 = vpop.f32.mrb[3].mxu1 }
 0x309   : > { %v604_v38 = vpop.f32.mrb[4].mxu1 }
 0x30a   : > { %v610_v39 = vmul.f32 0.17677669, %v604_v38  ;;  %v1213_v40 = vpop.f32.mrb[5].mxu1 }
 0x30b   : > { %v607_v41 = vpop.f32.mrb[6].mxu1 }
 0x30c   : > { %v1214_v42 = vpop.f32.mrb[7].mxu1  ;;  %v611_v43 = vadd.f32 %v1438_v5, %v610_v39 }
 0x30e   : > { %v612_v44 = vsel %vm440_vm1, %v611_v43, -inf }
 0x30f   : > { %613 = vmax.xlane.f32.xlu1 %v612_v44 }
 0x311   : > { %v719_v45 = vpop.f32.mrb[8].mxu1 }
 0x312   : > { %v725_v46 = vmul.f32 0.17677669, %v719_v45  ;;  %v1225_v47 = vpop.f32.mrb[9].mxu1 }
 0x313   : > { %v722_v48 = vpop.f32.mrb[10].mxu1 }
 0x314   : > { %v726_v49 = vadd.f32 %v1438_v5, %v725_v46  ;;  %v1226_v50 = vpop.f32.mrb[11].mxu1 }
 0x316   : > { %v727_v51 = vsel %vm440_vm1, %v726_v49, -inf }
 0x317   : > { %728 = vmax.xlane.f32.xlu0 %v727_v51  ;;  %v1170_v51 = vld [vmem:[%s1548_s6] ss:$0 sm:$0xff] }
 0x319   : > { %v831_v52 = vpop.f32.mrb[12].mxu1 }
 0x31a   : > { %v837_v53 = vmul.f32 0.17677669, %v831_v52  ;;  %v1237_v54 = vpop.f32.mrb[13].mxu1 }
 0x31b   : > { %v834_v55 = vpop.f32.mrb[14].mxu1 }
 0x31c   : > { %v838_v56 = vadd.f32 %v1438_v5, %v837_v53  ;;  %v1238_v57 = vpop.f32.mrb[15].mxu1  ;;  %v1164_v5 = vcombine.low %v1452_v19, %v1452_v19 }
 0x31e   : > { %v839_v58 = vsel %vm440_vm1, %v838_v56, -inf }
 0x31f   : > { %840 = vmax.xlane.f32.xlu1 %v839_v58 }
 0x39c   : > { %v614_v59 = vpop.xlane.xlu1 %613 }
 0x39d   : > { %v615_v60 = vsub.f32 %v611_v43, %v614_v59 }
 0x39f   : > { %v616_v61 = vmul.f32 1.442695, %v615_v60 }
 0x3a1   : > { %1294 = vpow2.f32 %v616_v61 }
 0x3a4   : > { %v729_v62 = vpop.xlane.xlu0 %728 }
 0x3a5   : > { %v730_v63 = vsub.f32 %v726_v49, %v729_v62 }
 0x3a7   : > { %v731_v1 = vmul.f32 1.442695, %v730_v63 }
 0x3a9   : > { %1296 = vpow2.f32 %v731_v1 }
 0x3ab   : > { %v1295_v2 = vpop.eup %1294 }
 0x3ac   : > { %v618_v3 = vsel %vm440_vm1, %v1295_v2, 0.0  ;;  %v841_v7 = vpop.xlane.xlu1 %840 }
 0x3ad   : > { %619 = vadd.xlane.f32.xlu1 %v618_v3  ;;  %v842_v8 = vsub.f32 %v838_v56, %v841_v7 }
 0x3af   : > { %v843_v9 = vmul.f32 1.442695, %v842_v8 }
 0x3b1   : > { %1298 = vpow2.f32 %v843_v9 }
 0x3b3   : > { %v1297_v4 = vpop.eup %1296 }
 0x3b4   : > { %v733_v6 = vsel %vm440_vm1, %v1297_v4, 0.0 }
 0x3b5   : > { %734 = vadd.xlane.f32.xlu0 %v733_v6 }
 0x3bb   : > { %v1299_v10 = vpop.eup %1298 }
 0x3bc   : > { %v845_v11 = vsel %vm440_vm1, %v1299_v10, 0.0 }
 0x3be   : > { %739 = vrot.lane.b32.xlu1 %v1164_v5, %s1337_s24  ;;  %s424_s24 = scalar_lea.vmem %s1545_s3, %s1156_s21 }
 0x3bf   : > { %v993_v1 = vld [vmem:[%s424_s24] sm:$0xff] }
 0x3cb   : > { %627 = vrot.lane.b32.xlu0 %v1164_v5, %s1336_s23 }
 0x3e2   : > { %846 = vadd.xlane.f32.xlu1 %v845_v11 }
 0x3f3   : > { %851 = vrot.lane.b32.xlu1 %v1164_v5, %s1338_s25 }
 0x43a   : > { %v620_v12 = vpop.xlane.xlu1 %619 }
 0x43b   : > { %1300 = vrcp.f32 %v620_v12 }
 0x43e   : > { %v740_v18 = vpop.permute.xlu1 %739 }
 0x43f   : > { %v745_v20 = vsel %vm510_vm2, %v740_v18, 0 }
 0x442   : > { %v735_v13 = vpop.xlane.xlu0 %734 }
 0x443   : > { %1302 = vrcp.f32 %v735_v13 }
 0x445   : > { %v1301_v14 = vpop.eup %1300 }
 0x446   : > { %v622_v15 = vmul.f32 %v1301_v14, %v1295_v2  ;;  %v628_v16 = vpop.permute.xlu0 %627  ;;  %v1174_v14 = vld [vmem:[%s1549_s7] ss:$0 sm:$0xff] }
 0x447   : > { %v633_v17 = vsel %vm510_vm2, %v628_v16, 0  ;;  %v1175_v16 = vld [vmem:[%s1550_s8] ss:$0 sm:$0xff] }
 0x448   : > { %1216 = vmatpush3.bf16.msra.mxu0 %v633_v17  ;;  %v623_v19 = vpack.c.bf16 %v622_v15, %v622_v15 }
 0x449   : > { %1227 = vmatprep.subr.bf16.mxu0 %v1334_v0 }
 0x44b   : > { %1218 = vmatmul.mubr.msk.bf16.vlgmr.msra.gmra.mrb[4].mxu0 %vm440_vm1, %v623_v19 }
 0x44c   : > { %1228 = vmatpush3.bf16.msra.mxu0 %v745_v20  ;;  %1229 = vmatprep.mubr.msk.bf16.mxu0 %vm1335_vm0, %v1334_v0 }
 0x44d   : > { %v1303_v21 = vpop.eup %1302  ;;  %1239 = vmatprep.subr.bf16.mxu0 %v1334_v0 }
 0x44e   : > { %v737_v22 = vmul.f32 %v1303_v21, %v1297_v4 }
 0x450   : > { %v738_v23 = vpack.c.bf16 %v737_v22, %v737_v22 }
 0x453   : > { %1230 = vmatmul.mubr.msk.bf16.vlgmr.msra.gmra.mrb[8].mxu0 %vm440_vm1, %v738_v23 }
 0x454   : > { %1241 = vmatprep.mubr.msk.bf16.mxu0 %vm1335_vm0, %v1334_v0 }
 0x46f   : > { %v847_v24 = vpop.xlane.xlu1 %846 }
 0x470   : > { %1304 = vrcp.f32 %v847_v24 }
 0x473   : > { %v852_v25 = vpop.permute.xlu1 %851 }
 0x474   : > { %v857_v26 = vsel %vm510_vm2, %v852_v25, 0 }
 0x475   : > { %1240 = vmatpush3.bf16.msra.mxu0 %v857_v26 }
 0x47a   : > { %v1305_v27 = vpop.eup %1304 }
 0x47b   : > { %v849_v28 = vmul.f32 %v1305_v27, %v1299_v10 }
 0x47d   : > { %v850_v29 = vpack.c.bf16 %v849_v28, %v849_v28 }
 0x47f   : > { %1242 = vmatmul.mubr.msk.bf16.vlgmr.msra.gmra.mrb[12].mxu0 %vm440_vm1, %v850_v29 }
 0x51e   : > { %v669_v32 = vpop.f32.mrb[4].mxu0 }
 0x51f   : > { %900 = vrot.lane.b32.xlu0 %v669_v32, %s1339_s16  ;;  %v1219_v33 = vpop.f32.mrb[5].mxu0 }
 0x520   : > { %v672_v35 = vpop.f32.mrb[6].mxu0 }
 0x521   : > { %v1220_v36 = vpop.f32.mrb[7].mxu0 }
 0x526   : > { %v781_v37 = vpop.f32.mrb[8].mxu0 }
 0x527   : > { %904 = vrot.lane.b32.xlu1 %v781_v37, %s1340_s17  ;;  %v1231_v38 = vpop.f32.mrb[9].mxu0 }
 0x528   : > { %v784_v39 = vpop.f32.mrb[10].mxu0 }
 0x529   : > { %v1232_v40 = vpop.f32.mrb[11].mxu0 }
 0x552   : > { %v893_v41 = vpop.f32.mrb[12].mxu0 }
 0x553   : > { %908 = vrot.lane.b32.xlu0 %v893_v41, %s1341_s18  ;;  %v1243_v42 = vpop.f32.mrb[13].mxu0 }
 0x554   : > { %v896_v43 = vpop.f32.mrb[14].mxu0 }
 0x555   : > { %v1244_v44 = vpop.f32.mrb[15].mxu0 }
 0x591   : > { %v901_v0 = vpop.permute.xlu0 %900 }
 0x592   : > { %v911_v46 = vsel %vm440_vm1, %v1476_v34, %v901_v0 }
 0x599   : > { %v905_v45 = vpop.permute.xlu1 %904 }
 0x59a   : > { %v913_v47 = vsel %vm912_vm3, %v911_v46, %v905_v45 }
 0x5c5   : > { %v909_v48 = vpop.permute.xlu0 %908 }
 0x5c6   : > { %v915_v49 = vsel %vm914_vm4, %v913_v47, %v909_v48 }
 0x5c7   : > { %v916_v50 = vpack.c.bf16 %v915_v49, %v915_v49 }
 0x5c9   : > { %1250 = vmatmul.mubr.msk.bf16.vlgmr.msra.gmra.mrb[16].mxu1 %vm940_vm5, %v916_v50 }
 0x69c   : > { %v978_v52 = vpop.f32.mrb[16].mxu1 }
 0x69d   : > { %v979_v53 = vadd.f32 %v1170_v51, %v978_v52  ;;  %v1251_v54 = vpop.f32.mrb[17].mxu1 }
 0x69e   : > { %v981_v55 = vpop.f32.mrb[18].mxu1 }
 0x69f   : > { %v985_v56 = vmul.f32 0.044715, %v979_v53  ;;  %v1252_v57 = vpop.f32.mrb[19].mxu1  ;;  %v984_v62 = vmul.f32 0.5, %v979_v53 }
 0x6a1   : > { %v986_v58 = vmul.f32 %v985_v56, %v979_v53 }
 0x6a3   : > { %v987_v34 = vmul.f32 %v986_v58, %v979_v53 }
 0x6a5   : > { %v988_v59 = vadd.f32 %v987_v34, %v979_v53 }
 0x6a7   : > { %v989_v60 = vmul.f32 0.7978846, %v988_v59 }
 0x6a9   : > { %1306 = vtanh.f32 %v989_v60 }
 0x6b3   : > { %v1307_v61 = vpop.eup %1306 }
 0x6b4   : > { %v991_v63 = vadd.f32 1.0, %v1307_v61 }
 0x6b6   : > { %v992_v2 = vmul.f32 %v991_v63, %v984_v62 }
 0x6b8   : > { %v994_v3 = vadd.f32 %v993_v1, %v992_v2 }
 0x6ba   : > { %v997_v4 = vsel %vm940_vm5, %v994_v3, 0.0 }
 0x6bb   : > { %998 = vadd.xlane.f32.xlu1 %v997_v4 }
 0x748   : > { %v999_v6 = vpop.xlane.xlu1 %998 }
 0x749   : > { %v1001_v5 = vmul.f32 0.03125, %v999_v6 }
 0x74b   : > { %v1002_v7 = vsub.f32 %v994_v3, %v1001_v5 }
 0x74d   : > { %v1003_v8 = vmul.f32 %v1002_v7, %v1002_v7 }
 0x74f   : > { %v1004_v9 = vsel %vm940_vm5, %v1003_v8, 0.0 }
 0x750   : > { %1005 = vadd.xlane.f32.xlu0 %v1004_v9 }
 0x7dd   : > { %v1006_v10 = vpop.xlane.xlu0 %1005 }
 0x7de   : > { %v1007_v11 = vmul.f32 0.03125, %v1006_v10 }
 0x7e0   : > { %v1008_v12 = vadd.f32 1e-10, %v1007_v11 }
 0x7e2   : > { %1308 = vrsqrt.f32 %v1008_v12 }
 0x7ec   : > { %v1309_v13 = vpop.eup %1308 }
 0x7ed   : > { %v1010_v15 = vmul.f32 %v1309_v13, %v1002_v7 }
 0x7ef   : > { %v1017_v17 = vmul.f32 %v1174_v14, %v1010_v15 }
 0x7f1   : > { %v1024_v18 = vadd.f32 %v1175_v16, %v1017_v17 }
 0x7f3   : > { %1025 = vst.msk [vmem:[%s434_s13] sm:$0xff] %vm940_vm5, %v1024_v18 }
 0x7f4 PF: > { %s19_s11 = sadd.s32 1, %s1332_s11   ;;  %s1552_s30 = smov %s1328_s10 }
 0x7f5   : > { %p16_p5 = scmp.ge.s32.totalorder %s19_s11, 4   ;;  %s1553_s10 = smov %s1555_s12 }
 0x7f7   :  { %18 = sbr.rel (!%p16_p5) target bundleno = 2 (0x2), region = 98 }

// kernel: bert_for_pretraining.6
= control target key start
LH: loop header
LB: loop body
LE: loop exit
PB: predicated region body
PF: predicated region fallthrough
CT: control target
= control target key end

     0   :  { %s531_s18 = smov 0   ;;  %s533_s19 = smov 0   ;;  %s579_s0 = inlined_call_operand.vmem [shape: f32[2,8,32], index: 0, kind: input, shape index: {}]   ;;  %s580_s1 = inlined_call_operand.vmem [shape: f32[2,8,32], index: 1, kind: input, shape index: {}]   ;;  %s581_s2 = inlined_call_operand.vmem [shape: f32[8,32], index: 2, kind: input, shape index: {}]   ;;  %s582_s3 = inlined_call_operand.vmem [shape: f32[1,32], index: 3, kind: input, shape index: {}]   ;;  %s583_s4 = inlined_call_operand.vmem [shape: f32[1,32], index: 4, kind: input, shape index: {}]   ;;  %s584_s5 = inlined_call_operand.vmem [shape: f32[2,8,32], index: 5, kind: output, shape index: {}]  }
   0x1   :  { %s535_s20 = smov 0  }
   0x2 LB: > { %s27_s21 = sadd.s32 1, %s495_s19  ;;  %p443_p0 = scmp.ge.s32.totalorder %s499_s20, 1  ;;  %s499_s20 = sphi %s535_s20, %s15_s20   ;;  %s495_s19 = sphi %s533_s19, %s586_s19   ;;  %s491_s18 = sphi %s531_s18, %s585_s18  }
   0x3   : > { %p29_p1 = scmp.ge.s32.totalorder %s27_s21, 2  ;;  %p228_p2 = scmp.lt.s32.totalorder %s499_s20, 3 }
   0x5   : > { %s588_s21 = smov (%p29_p1, %s27_s21), 0  ;;  %p229_p3 = pnand %p443_p0, %p228_p2 }
   0x6   : > { %p271_p4 = scmp.lt.s32.totalorder (!%p229_p3), %s491_s18, 1  ;;  %v299_v2 = vld [vmem:[%s581_s2] sm:$0xff] (!%p229_p3)  ;;  %vm303_vm0 = vcmask (!%p229_p3), 261120  }
   0x7   : > { %232 = sbr.rel (%p229_p3) target bundleno = 337 (0x151), region = 40  ;;  %v447_v15 = vld [vmem:[%s582_s3] ss:$0 sm:$0xff] (!%p229_p3) }
   0x8   : > { %v448_v17 = vld [vmem:[%s583_s4] ss:$0 sm:$0xff] (!%p229_p3) }
   0xe   : > { %s590_s18 = smov (!%p271_p4, %s491_s18), 1 }
   0xf   : > { %s444_s22 = sshll.u32 %s590_s18, 3 }
  0x10   : > { %s277_s25 = scalar_lea.vmem %s579_s0, %s444_s22  ;;  %s284_s28 = scalar_lea.vmem %s580_s1, %s444_s22 }
  0x11   : > { %v296_v0 = vld [vmem:[%s277_s25] sm:$0xff]  ;;  %s295_s12 = scalar_lea.vmem %s584_s5, %s444_s22 }
  0x12   : > { %v297_v1 = vld [vmem:[%s284_s28] sm:$0xff] }
  0x13   : > { %v298_v3 = vadd.f32 %v297_v1, %v296_v0 }
  0x15   : > { %v300_v4 = vadd.f32 %v299_v2, %v298_v3 }
  0x17   : > { %v304_v5 = vsel %vm303_vm0, %v300_v4, 0.0 }
  0x18   : > { %305 = vadd.xlane.f32.xlu0 %v304_v5 }
  0xa5   : > { %v306_v6 = vpop.xlane.xlu0 %305 }
  0xa6   : > { %v308_v7 = vmul.f32 0.03125, %v306_v6 }
  0xa8   : > { %v309_v8 = vsub.f32 %v300_v4, %v308_v7 }
  0xaa   : > { %v310_v9 = vmul.f32 %v309_v8, %v309_v8 }
  0xac   : > { %v311_v10 = vsel %vm303_vm0, %v310_v9, 0.0 }
  0xad   : > { %312 = vadd.xlane.f32.xlu0 %v311_v10 }
 0x13a   : > { %v313_v11 = vpop.xlane.xlu0 %312 }
 0x13b   : > { %v314_v12 = vmul.f32 0.03125, %v313_v11 }
 0x13d   : > { %v315_v13 = vadd.f32 1e-12, %v314_v12 }
 0x13f   : > { %475 = vrsqrt.f32 %v315_v13 }
 0x149   : > { %v476_v14 = vpop.eup %475 }
 0x14a   : > { %v317_v16 = vmul.f32 %v476_v14, %v309_v8 }
 0x14c   : > { %v324_v18 = vmul.f32 %v447_v15, %v317_v16 }
 0x14e   : > { %v331_v19 = vadd.f32 %v448_v17, %v324_v18 }
 0x150   : > { %332 = vst.msk [vmem:[%s295_s12] sm:$0xff] %vm303_vm0, %v331_v19 }
 0x151 PF: > { %s15_s20 = sadd.s32 1, %s499_s20   ;;  %s585_s18 = smov %s495_s19 }
 0x152   : > { %p12_p5 = scmp.ge.s32.totalorder %s15_s20, 4   ;;  %s586_s19 = smov %s588_s21 }
 0x154   :  { %14 = sbr.rel (!%p12_p5) target bundleno = 2 (0x2), region = 76 }

// kernel: bert_for_pretraining.11
= control target key start
LH: loop header
LB: loop body
LE: loop exit
PB: predicated region body
PF: predicated region fallthrough
CT: control target
= control target key end

     0   :  { %v243_v0 = vmov 0.0   ;;  %vm244_vm0 = vmmov 0   ;;  %vm59_vm1 = vcmask 261120   ;;  %v245_v4 = vmov 0   ;;  %s316_s1 = inlined_call_operand.vmem [shape: bf16[32,64], index: 1, kind: input, shape index: {}]   ;;  %s317_s0 = inlined_call_operand.vmem [shape: bf16[16,32], index: 0, kind: input, shape index: {}]   ;;  %s318_s2 = inlined_call_operand.vmem [shape: f32[1,64], index: 2, kind: input, shape index: {}]   ;;  %s319_s3 = inlined_call_operand.vmem [shape: s32[16,1], index: 3, kind: input, shape index: {}]   ;;  %s320_s4 = inlined_call_operand.vmem [shape: f32[16,1], index: 4, kind: output, shape index: {}]  }
   0x1   :  { %214 = vmatprep.subr.bf16.mxu0 %v243_v0  ;;  %v228_v1 = vld [vmem:[%s316_s1] sm:$0xff]   ;;  %218 = vmatprep.mubr.msk.bf16.mxu0 %vm244_vm0, %v243_v0  ;;  %v229_v2 = vld [vmem:[%s316_s1 + $0x8] sm:$0xff]   ;;  %vm22_vm2 = vcmask 7168   ;;  %v246_v5 = vmov -inf   ;;  %vm123_vm3 = vcmask 523264   ;;  %v105_v23 = vlaneseq }
   0x2   :  { %215 = vmatpush3.bf16.msra.mxu0 %v228_v1  ;;  %v230_v3 = vld [vmem:[%s317_s0] sm:$0xff]   ;;  %227 = vset.pattern.permute.xlu0 %v245_v4  ;;  %23 = vst.msk [vmem:[#allocation2] sm:$0xff] %vm22_vm2, %v246_v5  ;;  %24 = vst.msk [vmem:[#allocation2 + $0x8] sm:$0xff] %vm22_vm2, %v246_v5  ;;  %v110_v25 = vld [vmem:[%s319_s3 + $0x8] sm:$0xff] }
   0x3   :  { %216 = vmatprep.subr.bf16.mxu0 %v243_v0  ;;  %226 = vset.pattern.permute.xlu1 %v245_v4  ;;  %25 = vst.msk [vmem:[#allocation3] sm:$0xff] %vm22_vm2, %v243_v0  ;;  %26 = vst.msk [vmem:[#allocation3 + $0x8] sm:$0xff] %vm22_vm2, %v243_v0  ;;  %v206_v6 = vld [vmem:[%s318_s2] ss:$0 sm:$0xff]  ;;  %v106_v26 = vand.u32 127, %v105_v23 }
   0x4   :  { %27 = vst.msk [vmem:[#allocation4] sm:$0xff] %vm22_vm2, %v243_v0  ;;  %28 = vst.msk [vmem:[#allocation4 + $0x8] sm:$0xff] %vm22_vm2, %v243_v0  ;;  %v109_v15 = vld [vmem:[%s319_s3] sm:$0xff] }
   0x6   :  { %217 = vmatpush3.bf16.msra.mxu0 %v229_v2 }
   0x9   :  { %219 = vmatmul.mubr.msk.bf16.vlgmr.msra.gmra.mrb[0].mxu0 %vm59_vm1, %v230_v3  ;;  %v135_v16 = vld [vmem:[#allocation2] sm:$0xff]  ;;  %v136_v19 = vld [vmem:[#allocation2 + $0x8] sm:$0xff] }
   0xa   :  { %v145_v49 = vld [vmem:[#allocation3] sm:$0xff]  ;;  %v146_v53 = vld [vmem:[#allocation3 + $0x8] sm:$0xff] }
   0xb   :  { %v119_v43 = vld [vmem:[#allocation4] sm:$0xff]  ;;  %v120_v58 = vld [vmem:[#allocation4 + $0x8] sm:$0xff] }
  0xdc   :  { %v97_v7 = vpop.f32.mrb[0].mxu0 }
  0xdd   :  { %v98_v8 = vadd.f32 %v206_v6, %v97_v7  ;;  %v220_v9 = vpop.f32.mrb[1].mxu0 }
  0xde   :  { %v100_v10 = vpop.f32.mrb[2].mxu0 }
  0xdf   :  { %v101_v11 = vadd.f32 %v206_v6, %v100_v10  ;;  %v221_v12 = vpop.f32.mrb[3].mxu0  ;;  %v137_v13 = vsel %vm123_vm3, %v98_v8, -inf }
  0xe0   :  { %138 = vmax.xlane.f32.xlu0 %v137_v13 }
  0xe1   :  { %v140_v14 = vsel %vm123_vm3, %v101_v11, -inf }
  0xe4   :  { %141 = vmax.xlane.f32.xlu0 %v140_v14 }
  0xfa   :  { %112 = vperm.xlu0 %227, %v109_v15  }
 0x16d   :  { %v139_v17 = vpop.xlane.xlu0 %138 }
 0x16e   :  { %v143_v18 = vmax.f32 %v135_v16, %v139_v17 }
 0x170   :  { %v147_v20 = vsub.f32 %v135_v16, %v143_v18  ;;  %181 = vst.msk [vmem:[#allocation2] sm:$0xff] %vm22_vm2, %v143_v18  ;;  %157 = vperm.xlu1 %226, %v143_v18  }
 0x171   :  { %v142_v21 = vpop.xlane.xlu0 %141 }
 0x172   :  { %v144_v22 = vmax.f32 %v136_v19, %v142_v21  ;;  %v149_v46 = vmul.f32 1.442695, %v147_v20 }
 0x174   :  { %v148_v24 = vsub.f32 %v136_v19, %v144_v22  ;;  %182 = vst.msk [vmem:[#allocation2 + $0x8] sm:$0xff] %vm22_vm2, %v144_v22  ;;  %162 = vperm.xlu1 %226, %v144_v22  }
 0x176   :  { %v151_v47 = vmul.f32 1.442695, %v148_v24 }
 0x177   :  { %v186_v1 = vld [vmem:[#allocation2] sm:$0xff] }
 0x178   :  { %115 = vperm.xlu1 %226, %v110_v25  }
 0x179   :  { %v113_v27 = vpop.permute.xlu0 %112 }
 0x17a   :  { %vm117_vm4 = vcmp.eq.s32.totalorder %v106_v26, %v113_v27 }
 0x17b   :  { %v121_v28 = vsel %vm117_vm4, %v98_v8, 0.0  ;;  %v187_v7 = vld [vmem:[#allocation2 + $0x8] sm:$0xff] }
 0x17c   :  { %v124_v29 = vsel %vm123_vm3, %v121_v28, 0.0 }
 0x17d   :  { %125 = vadd.xlane.f32.xlu0 %v124_v29 }
 0x1ef   :  { %v158_v30 = vpop.permute.xlu1 %157 }
 0x1f0   :  { %v165_v31 = vsub.f32 %v98_v8, %v158_v30 }
 0x1f2   :  { %v167_v32 = vmul.f32 1.442695, %v165_v31 }
 0x1f3   :  { %v163_v33 = vpop.permute.xlu1 %162 }
 0x1f4   :  { %231 = vpow2.f32 %v167_v32  ;;  %v166_v34 = vsub.f32 %v101_v11, %v163_v33 }
 0x1f6   :  { %v169_v35 = vmul.f32 1.442695, %v166_v34 }
 0x1f7   :  { %v116_v37 = vpop.permute.xlu1 %115 }
 0x1f8   :  { %233 = vpow2.f32 %v169_v35  ;;  %vm118_vm5 = vcmp.eq.s32.totalorder %v106_v26, %v116_v37 }
 0x1f9   :  { %v122_v41 = vsel %vm118_vm5, %v101_v11, 0.0  ;;  %235 = vpow2.f32 %v149_v46 }
 0x1fa   :  { %v127_v42 = vsel %vm123_vm3, %v122_v41, 0.0  ;;  %237 = vpow2.f32 %v151_v47 }
 0x1fe   :  { %v232_v36 = vpop.eup %231 }
 0x1ff   :  { %v171_v38 = vsel %vm123_vm3, %v232_v36, 0.0 }
 0x200   :  { %172 = vadd.xlane.f32.xlu1 %v171_v38 }
 0x202   :  { %v234_v39 = vpop.eup %233 }
 0x203   :  { %v174_v40 = vsel %vm123_vm3, %v234_v39, 0.0  ;;  %v236_v48 = vpop.eup %235 }
 0x204   :  { %175 = vadd.xlane.f32.xlu1 %v174_v40  ;;  %v153_v50 = vmul.f32 %v236_v48, %v145_v49  ;;  %v238_v51 = vpop.eup %237 }
 0x205   :  { %v154_v55 = vmul.f32 %v238_v51, %v146_v53 }
 0x208   :  { %128 = vadd.xlane.f32.xlu1 %v127_v42 }
 0x20a   :  { %v126_v44 = vpop.xlane.xlu0 %125 }
 0x20b   :  { %v130_v45 = vadd.f32 %v126_v44, %v119_v43 }
 0x20d   :  { %133 = vst.msk [vmem:[#allocation4] sm:$0xff] %vm22_vm2, %v130_v45 }
 0x214   :  { %v196_v4 = vld [vmem:[#allocation4] sm:$0xff] }
 0x28d   :  { %v173_v52 = vpop.xlane.xlu1 %172 }
 0x28e   :  { %v177_v54 = vadd.f32 %v173_v52, %v153_v50 }
 0x290   :  { %179 = vst.msk [vmem:[#allocation3] sm:$0xff] %vm22_vm2, %v177_v54 }
 0x291   :  { %v176_v56 = vpop.xlane.xlu1 %175 }
 0x292   :  { %v178_v57 = vadd.f32 %v176_v56, %v154_v55 }
 0x294   :  { %180 = vst.msk [vmem:[#allocation3 + $0x8] sm:$0xff] %vm22_vm2, %v178_v57 }
 0x295   :  { %v129_v59 = vpop.xlane.xlu1 %128 }
 0x296   :  { %v131_v60 = vadd.f32 %v129_v59, %v120_v58 }
 0x297   :  { %v188_v61 = vld [vmem:[#allocation3] sm:$0xff] }
 0x298   :  { %239 = vlog2.f32 %v188_v61  ;;  %134 = vst.msk [vmem:[#allocation4 + $0x8] sm:$0xff] %vm22_vm2, %v131_v60 }
 0x29b   :  { %v189_v62 = vld [vmem:[#allocation3 + $0x8] sm:$0xff] }
 0x29c   :  { %241 = vlog2.f32 %v189_v62 }
 0x29f   :  { %v197_v9 = vld [vmem:[#allocation4 + $0x8] sm:$0xff] }
 0x2a2   :  { %v240_v63 = vpop.eup %239 }
 0x2a3   :  { %v191_v0 = vmul.f32 0.6931472, %v240_v63 }
 0x2a5   :  { %v194_v2 = vadd.f32 %v191_v0, %v186_v1 }
 0x2a6   :  { %v242_v3 = vpop.eup %241 }
 0x2a7   :  { %v198_v5 = vsub.f32 %v194_v2, %v196_v4  ;;  %v193_v6 = vmul.f32 0.6931472, %v242_v3 }
 0x2a9   :  { %v195_v8 = vadd.f32 %v193_v6, %v187_v7  ;;  %200 = vst.msk [vmem:[%s320_s4] sm:$0xff] %vm22_vm2, %v198_v5 }
 0x2ab   :  { %v199_v10 = vsub.f32 %v195_v8, %v197_v9 }
 0x2ad   :  { %201 = vst.msk [vmem:[%s320_s4 + $0x8] sm:$0xff] %vm22_vm2, %v199_v10 }

</bundles_post_ra>
